<compile_context>
chip_gen: v7x
topology: tpu7x:2x2x1
jax: 0.10.0
libtpu: 0.0.40
codegen_flags: <defaults>
</compile_context>

<pallas_src>
import functools
import math

import jax
import jax.numpy as jnp
from jax import lax
from jax.experimental import pallas as pl
from jax.experimental.pallas import tpu as pltpu

_INV_SQRT2 = 0.7071067811865476
_SQRT_2_OVER_PI = 0.7978845608028654
_GELU_C = 0.044715


def _gelu_tanh(x):
    # tanh-approximate GELU: the transcendental runs on the EUP slot instead of
    # lowering erf to a ~15-op VALU polynomial on the saturating vector slot.
    return 0.5 * x * (1.0 + jnp.tanh(_SQRT_2_OVER_PI * (x + _GELU_C * (x * x * x))))


def _mlp_kernel(x_ref, halo_ref, mask_ref, w1_ref, b1_ref, wdw_ref, bdw_ref,
                w2_ref, b2_ref, o_ref, *, approximate_gelu=True, use_roll=True):
    """One (batch n, row-tile i) grid step, channel-major layout.

    x_ref   : (1, Cin, P)      bf16, P = tile_rows * W (lane-dense pixel slab)
    halo_ref: (1, 1, Cin, 2W)  bf16, [row above tile | row below tile] (clamped)
    mask_ref: (2, P)           compute dtype, [col != 0 | col != W-1] masks
    w1_ref  : (Chid, Cin) bf16     b1_ref : (Chid, 1) f32
    wdw_ref : (Chid, 9)  compute   bdw_ref: (Chid, 1) compute
    w2_ref  : (Cout, Chid) bf16    b2_ref : (Cout, 1) f32
    o_ref   : (1, Cout, P) f32
    """
    P = x_ref.shape[2]
    W = halo_ref.shape[3] // 2
    cdt = wdw_ref.dtype                      # VPU compute dtype (bf16 on v6e/v7x)

    x = x_ref[0]                             # (Cin, P)
    xh = halo_ref[0, 0]                      # (Cin, 2W)

    # ---- fc1 (1x1 conv): bf16 MXU matmuls, f32 accumulation ----
    h_main = jnp.dot(w1_ref[...], x, preferred_element_type=jnp.float32) + b1_ref[...]
    h_halo = jnp.dot(w1_ref[...], xh, preferred_element_type=jnp.float32) + b1_ref[...]

    # Halo rows outside the image implement the conv's zero padding; fc1 of a
    # clamped row + bias is NOT zero, so zero them.  Only the tiny (Chid, 2W)
    # halo slab pays for this on every step.
    i = pl.program_id(1)
    last = pl.num_programs(1) - 1
    hcol = lax.broadcasted_iota(jnp.int32, (1, 2 * W), 1)
    oob = jnp.logical_or(jnp.logical_and(i == 0, hcol < W),
                         jnp.logical_and(i == last, hcol >= W))
    h_halo = jnp.where(oob, 0.0, h_halo)

    hm = h_main.astype(cdt)                  # (Chid, P)
    hh = h_halo.astype(cdt)                  # (Chid, 2W)

    # ---- depthwise 3x3 conv ----
    # Row-shifted views: value at (row-1, col) / (row+1, col) for every pixel.
    up = jnp.concatenate([hh[:, :W], hm[:, :P - W]], axis=1)   # (Chid, P)
    dn = jnp.concatenate([hm[:, W:], hh[:, W:]], axis=1)       # (Chid, P)

    w = wdw_ref[...]                         # tap (kh, kw) stored at column kh*3 + kw

    def col_chain(kw):                       # fixed kw, summed over kh = 0..2
        return (w[:, kw:kw + 1] * up + w[:, kw + 3:kw + 4] * hm
                + w[:, kw + 6:kw + 7] * dn)

    def shift_right(v):                      # out[:, p] = v[:, p-1] (wrap masked)
        if use_roll:
            return pltpu.roll(v, shift=1, axis=1)
        return jnp.concatenate([v[:, P - 1:], v[:, :P - 1]], axis=1)

    def shift_left(v):                       # out[:, p] = v[:, p+1] (wrap masked)
        if use_roll:
            return pltpu.roll(v, shift=P - 1, axis=1)
        return jnp.concatenate([v[:, 1:], v[:, :1]], axis=1)

    # dx = -1 / 0 / +1 chains; wrap-around and per-row boundaries are killed by
    # the precomputed column masks (conv zero padding at the left/right edges).
    mid = col_chain(1) + bdw_ref[...]
    left = shift_right(col_chain(0)) * mask_ref[0:1, :]
    right = shift_left(col_chain(2)) * mask_ref[1:2, :]
    d = mid + left + right

    # ---- GELU ----
    if approximate_gelu:
        act = _gelu_tanh(d)
    else:
        d32 = d.astype(jnp.float32)          # exact torch.nn.GELU() (erf) form
        act = 0.5 * d32 * (1.0 + lax.erf(d32 * _INV_SQRT2))

    # ---- fc2 (1x1 conv): bf16 MXU matmul, f32 accumulation ----
    out = jnp.dot(w2_ref[...], act.astype(jnp.bfloat16),
                  preferred_element_type=jnp.float32) + b2_ref[...]
    o_ref[0] = out.astype(o_ref.dtype)


def _default_compute_dtype():
    """bf16 VPU math on v6e/v7x (packed, 2 elems/lane); f32 on chips without a
    bf16 VPU/EUP (v5e and older)."""
    try:
        kind = jax.devices()[0].device_kind.lower()
    except Exception:
        return jnp.bfloat16
    for old in ("v2", "v3", "v4", "v5 lite", "v5lite", "v5e"):
        if old in kind:
            return jnp.float32
    return jnp.bfloat16


def _vmem_budget():
    """(vmem_limit_bytes, f32 hidden-slab budget) sized to the chip generation:
    ~64 MiB limit on 128-MiB-VMEM chips (v5e/v6e), ~32 MiB on v7x (64 MiB VMEM)."""
    try:
        cap = int(pltpu.get_tpu_info().vmem_capacity_bytes)
    except Exception:
        cap = 64 * 1024 * 1024               # conservative if the query fails
    limit = int(min(max(cap // 2, 16 * 1024 * 1024), 64 * 1024 * 1024))
    return limit, max(1 << 20, limit // 12)


def _choose_tile_rows(H, W, hidden, budget_bytes):
    """Pick a row-tile height TH that divides H.  Preference order: the f32
    (hidden, TH*W) slab fits the budget; lane-aligned pixel blocks
    (TH*W % 128 == 0); >= 2 row tiles for pipelining (unless that forces
    degenerate lane-sparse tiles); largest TH."""
    # TODO(synk): support a ragged last row-tile so TH*W can be forced to a
    # multiple of 128 for widths like 56/28/14 where no divisor is lane-aligned.
    divs = [t for t in range(1, H + 1) if H % t == 0]
    fits = lambda t: hidden * t * W * 4 <= budget_bytes
    aligned = lambda t: (t * W) % 128 == 0
    multi = lambda t: H // t >= 2
    for pred in ((lambda t: fits(t) and aligned(t) and multi(t)),
                 (lambda t: fits(t) and aligned(t)),
                 (lambda t: fits(t) and multi(t) and t * W >= 256),
                 (lambda t: fits(t))):
        cand = [t for t in divs if pred(t)]
        if cand:
            return max(cand)
    return min(divs)


def mlp_forward(x_nchw, params, tile_rows=None, approximate_gelu=True,
                compute_dtype=None):
    """VAN Mlp forward.  x_nchw: (N, Cin, H, W) f32 -> (N, Cout, H, W) f32."""
    w1, b1, wdw, bdw, w2, b2 = params
    N, Cin, H, W = x_nchw.shape
    Chid, Cout = w1.shape[0], w2.shape[0]
    if compute_dtype is None:
        compute_dtype = _default_compute_dtype()

    vmem_limit, slab_budget = _vmem_budget()
    TH = tile_rows if tile_rows is not None else _choose_tile_rows(H, W, Chid, slab_budget)
    assert H % TH == 0, "tile_rows must divide H"
    nI = H // TH
    P = TH * W

    # Wrapper-side layout plumbing (cheap in XLA): bf16 activations (half the
    # input DMA bytes), flattened pixels, and ONE combined halo fetch per tile
    # holding [row above | row below] (clamped; kernel zeroes image boundaries).
    x_bf = x_nchw.astype(jnp.bfloat16)
    x_flat = x_bf.reshape(N, Cin, H * W)
    rows = jnp.arange(nI)
    top = jnp.transpose(x_bf[:, :, jnp.maximum(rows * TH - 1, 0), :], (0, 2, 1, 3))
    bot = jnp.transpose(x_bf[:, :, jnp.minimum(rows * TH + TH, H - 1), :], (0, 2, 1, 3))
    halo = jnp.concatenate([top, bot], axis=3)                  # (N, nI, Cin, 2W)

    # Grid-invariant left/right column-boundary masks (avoids iota + %W per step).
    colp = jnp.arange(P) % W
    masks = jnp.stack([(colp != 0), (colp != W - 1)]).astype(compute_dtype)  # (2, P)

    w1_bf = w1.astype(jnp.bfloat16)
    w2_bf = w2.astype(jnp.bfloat16)
    wdw_c = wdw.astype(compute_dtype)
    bdw_c = bdw.astype(compute_dtype)

    cost = pl.CostEstimate(
        flops=int(2 * N * Chid * (Cin * (H * W + nI * 2 * W) + 9 * H * W + Cout * H * W)),
        transcendentals=int(N * H * W * Chid),
        bytes_accessed=int(2 * N * Cin * (H * W + nI * 2 * W) + 4 * N * Cout * H * W
                           + 2 * Chid * (Cin + Cout + 11) + 4 * (Chid + Cout) + 4 * P),
    )

    def build(use_roll):
        kernel = functools.partial(_mlp_kernel,
                                   approximate_gelu=approximate_gelu,
                                   use_roll=use_roll)
        return pl.pallas_call(
            kernel,
            out_shape=jax.ShapeDtypeStruct((N, Cout, H * W), jnp.float32),
            grid=(N, nI),
            in_specs=[
                pl.BlockSpec((1, Cin, P), lambda n, i: (n, 0, i)),            # x tile
                pl.BlockSpec((1, 1, Cin, 2 * W), lambda n, i: (n, i, 0, 0)),  # halo rows
                pl.BlockSpec((2, P), lambda n, i: (0, 0)),                    # col masks
                pl.BlockSpec((Chid, Cin), lambda n, i: (0, 0)),               # w1 (bf16)
                pl.BlockSpec((Chid, 1), lambda n, i: (0, 0)),                 # b1 (f32)
                pl.BlockSpec((Chid, 9), lambda n, i: (0, 0)),                 # dw weights
                pl.BlockSpec((Chid, 1), lambda n, i: (0, 0)),                 # dw bias
                pl.BlockSpec((Cout, Chid), lambda n, i: (0, 0)),              # w2 (bf16)
                pl.BlockSpec((Cout, 1), lambda n, i: (0, 0)),                 # b2 (f32)
            ],
            out_specs=pl.BlockSpec((1, Cout, P), lambda n, i: (n, 0, i)),
            compiler_params=pltpu.CompilerParams(
                dimension_semantics=("parallel", "parallel"),
                vmem_limit_bytes=vmem_limit,
            ),
            cost_estimate=cost,
        )

    args = (x_flat, halo, masks, w1_bf, b1, wdw_c, bdw_c, w2_bf, b2)
    try:
        out_flat = build(True)(*args)
    except Exception:
        # TODO(synk): drop this fallback once pltpu.roll on packed dtypes is
        # guaranteed on all targeted chip generations; the concat shift is
        # mathematically identical, just heavier on vld/vst.
        out_flat = build(False)(*args)

    return out_flat.reshape(N, Cout, H, W)


def init_params(key, in_features, hidden_features, out_features):
    """Mimics Mlp._init_weights for nn.Conv2d: N(0, sqrt(2/fan_out)), bias = 0.
    Weights are stored channel-major: w1 (Chid, Cin), wdw (Chid, 9), w2 (Cout, Chid)."""
    k1, k2, k3 = jax.random.split(key, 3)
    std1 = math.sqrt(2.0 / hidden_features)             # fc1: fan_out = 1*1*hidden
    w1 = jax.random.normal(k1, (hidden_features, in_features), jnp.float32) * std1
    b1 = jnp.zeros((hidden_features, 1), jnp.float32)
    stdd = math.sqrt(2.0 / 9.0)                          # dwconv: fan_out = 3*3*hid/hid
    wdw = jax.random.normal(k2, (hidden_features, 9), jnp.float32) * stdd
    bdw = jnp.zeros((hidden_features, 1), jnp.float32)
    std2 = math.sqrt(2.0 / out_features)                 # fc2: fan_out = 1*1*out
    w2 = jax.random.normal(k3, (out_features, hidden_features), jnp.float32) * std2
    b2 = jnp.zeros((out_features, 1), jnp.float32)
    return (w1, b1, wdw, bdw, w2, b2)


def mlp_reference(x_nchw, params, match_kernel_precision=False,
                  approximate_gelu=True, compute_dtype=jnp.bfloat16):
    """Pure-JAX reference.  match_kernel_precision=True mirrors the kernel's
    bf16 MXU operands, bf16 tap chain and tanh GELU (tight check); False is the
    plain f32 / exact-erf module semantics (loose check)."""
    w1, b1, wdw, bdw, w2, b2 = params
    N, Cin, H, W = x_nchw.shape
    Chid = w1.shape[0]
    w33 = wdw.reshape(Chid, 3, 3)

    if not match_kernel_precision:
        h = jnp.einsum('oc,nchw->nohw', w1, x_nchw) + b1.reshape(1, Chid, 1, 1)
        pad = jnp.pad(h, ((0, 0), (0, 0), (1, 1), (1, 1)))
        d = bdw.reshape(1, Chid, 1, 1) + sum(
            pad[:, :, kh:kh + H, kw:kw + W] * w33[:, kh, kw].reshape(1, Chid, 1, 1)
            for kh in range(3) for kw in range(3))
        act = 0.5 * d * (1.0 + lax.erf(d * _INV_SQRT2))
        return jnp.einsum('oc,nchw->nohw', w2, act) + b2.reshape(1, -1, 1, 1)

    cdt = compute_dtype
    xb = x_nchw.astype(jnp.bfloat16)
    h = jnp.einsum('oc,nchw->nohw', w1.astype(jnp.bfloat16), xb,
                   preferred_element_type=jnp.float32) + b1.reshape(1, Chid, 1, 1)
    hm = h.astype(cdt)
    zrow = jnp.zeros((N, Chid, 1, W), cdt)
    up = jnp.concatenate([zrow, hm[:, :, :H - 1, :]], axis=2)
    dn = jnp.concatenate([hm[:, :, 1:, :], zrow], axis=2)
    w9 = wdw.astype(cdt)

    def col_chain(kw):
        return (w9[:, kw].reshape(1, Chid, 1, 1) * up
                + w9[:, kw + 3].reshape(1, Chid, 1, 1) * hm
                + w9[:, kw + 6].reshape(1, Chid, 1, 1) * dn)

    zcol = jnp.zeros((N, Chid, H, 1), cdt)
    mid = col_chain(1) + bdw.astype(cdt).reshape(1, Chid, 1, 1)
    left = jnp.concatenate([zcol, col_chain(0)[:, :, :, :W - 1]], axis=3)
    right = jnp.concatenate([col_chain(2)[:, :, :, 1:], zcol], axis=3)
    d = mid + left + right
    if approximate_gelu:
        act = _gelu_tanh(d)
    else:
        d32 = d.astype(jnp.float32)
        act = 0.5 * d32 * (1.0 + lax.erf(d32 * _INV_SQRT2))
    out = jnp.einsum('oc,nchw->nohw', w2.astype(jnp.bfloat16),
                     act.astype(jnp.bfloat16),
                     preferred_element_type=jnp.float32) + b2.reshape(1, -1, 1, 1)
    return out


if __name__ == "__main__":
    key = jax.random.PRNGKey(0)
    kx, kp = jax.random.split(key)

    N, Cin, H, W = 2, 4, 16, 16
    hidden = 32
    Cout = Cin                              # out_features defaults to in_features

    x = jax.random.normal(kx, (N, Cin, H, W), jnp.float32)
    params = init_params(kp, Cin, hidden, Cout)
    cdt = _default_compute_dtype()

    # Tile heuristic picks tile_rows=8 -> grid (2 batches, 2 row tiles), covering
    # both image-boundary halo paths and the interior-tile path.
    y = jax.block_until_ready(mlp_forward(x, params, compute_dtype=cdt))
    assert y.shape == (N, Cout, H, W)

    # Tight check vs a reference mirroring the kernel's precision choices.
    y_match = mlp_reference(x, params, match_kernel_precision=True,
                            approximate_gelu=True, compute_dtype=cdt)
    assert jnp.allclose(y, y_match, atol=5e-2, rtol=5e-2), \
        "mismatch vs precision-matched reference"
    # Looser check vs the plain f32 / exact-erf module semantics.
    y_f32 = mlp_reference(x, params, match_kernel_precision=False)
    assert jnp.allclose(y, y_f32, atol=2e-1, rtol=1e-1), "mismatch vs f32 reference"

    print("KERNEL_OK")
</pallas_src>

<mosaic_0001>
module attributes {stable_mosaic.version = 11 : i64} {
  func.func @_mlp_kernel(%arg0: i32, %arg1: i32, %arg2: memref<1x4x128xbf16, #tpu.memory_space<vmem>>, %arg3: memref<1x1x4x32xbf16, #tpu.memory_space<vmem>>, %arg4: memref<2x128xbf16, #tpu.memory_space<vmem>>, %arg5: memref<32x4xbf16, #tpu.memory_space<vmem>>, %arg6: memref<32x1xf32, #tpu.memory_space<vmem>>, %arg7: memref<32x9xbf16, #tpu.memory_space<vmem>>, %arg8: memref<32x1xbf16, #tpu.memory_space<vmem>>, %arg9: memref<4x32xbf16, #tpu.memory_space<vmem>>, %arg10: memref<4x1xf32, #tpu.memory_space<vmem>>, %arg11: memref<1x4x128xf32, #tpu.memory_space<vmem>>) attributes {dimension_semantics = [#tpu.dimension_semantics<parallel>, #tpu.dimension_semantics<parallel>], iteration_bounds = array<i64: 2, 2>, scalar_prefetch = 0 : i64, scratch_operands = 0 : i64, tpu.core_type = #tpu.core_type<tc>, window_params = [{transform_indices = @transform_0, window_bounds = array<i64: 1, 4, 128>}, {transform_indices = @transform_1, window_bounds = array<i64: 1, 1, 4, 32>}, {pipeline_mode = #tpu.pipeline_mode<synchronous>, transform_indices = @transform_2, window_bounds = array<i64: 2, 128>}, {pipeline_mode = #tpu.pipeline_mode<synchronous>, transform_indices = @transform_3, window_bounds = array<i64: 32, 4>}, {pipeline_mode = #tpu.pipeline_mode<synchronous>, transform_indices = @transform_4, window_bounds = array<i64: 32, 1>}, {pipeline_mode = #tpu.pipeline_mode<synchronous>, transform_indices = @transform_5, window_bounds = array<i64: 32, 9>}, {pipeline_mode = #tpu.pipeline_mode<synchronous>, transform_indices = @transform_6, window_bounds = array<i64: 32, 1>}, {pipeline_mode = #tpu.pipeline_mode<synchronous>, transform_indices = @transform_7, window_bounds = array<i64: 4, 32>}, {pipeline_mode = #tpu.pipeline_mode<synchronous>, transform_indices = @transform_8, window_bounds = array<i64: 4, 1>}, {transform_indices = @transform_9, window_bounds = array<i64: 1, 4, 128>}]} {
    %c0 = arith.constant 0 : index
    %c0_0 = arith.constant 0 : index
    %c0_1 = arith.constant 0 : index
    %0 = vector.load %arg2[%c0, %c0_0, %c0_1] : memref<1x4x128xbf16, #tpu.memory_space<vmem>>, vector<1x4x128xbf16>
    %1 = vector.shape_cast %0 : vector<1x4x128xbf16> to vector<4x128xbf16>
    %c0_2 = arith.constant 0 : index
    %c0_3 = arith.constant 0 : index
    %c0_4 = arith.constant 0 : index
    %c0_5 = arith.constant 0 : index
    %2 = vector.load %arg3[%c0_2, %c0_3, %c0_4, %c0_5] : memref<1x1x4x32xbf16, #tpu.memory_space<vmem>>, vector<1x1x4x32xbf16>
    %3 = vector.shape_cast %2 : vector<1x1x4x32xbf16> to vector<4x32xbf16>
    %c0_6 = arith.constant 0 : index
    %c0_7 = arith.constant 0 : index
    %4 = vector.load %arg5[%c0_6, %c0_7] : memref<32x4xbf16, #tpu.memory_space<vmem>>, vector<32x4xbf16>
    %cst = arith.constant dense<0.000000e+00> : vector<32x128xf32>
    %5 = tpu.matmul %4, %1, %cst {dimension_numbers = #tpu.dot_dimension_numbers<[1], [0], [0], [1], [0, 0, 1, 1], [], []>} : vector<32x4xbf16>, vector<4x128xbf16>, vector<32x128xf32> -> vector<32x128xf32>
    %c0_8 = arith.constant 0 : index
    %c0_9 = arith.constant 0 : index
    %6 = vector.load %arg6[%c0_8, %c0_9] : memref<32x1xf32, #tpu.memory_space<vmem>>, vector<32x1xf32>
    %7 = vector.broadcast %6 : vector<32x1xf32> to vector<32x128xf32>
    %8 = arith.addf %5, %7 : vector<32x128xf32>
    %c0_10 = arith.constant 0 : index
    %c0_11 = arith.constant 0 : index
    %9 = vector.load %arg5[%c0_10, %c0_11] : memref<32x4xbf16, #tpu.memory_space<vmem>>, vector<32x4xbf16>
    %cst_12 = arith.constant dense<0.000000e+00> : vector<32x32xf32>
    %10 = tpu.matmul %9, %3, %cst_12 {dimension_numbers = #tpu.dot_dimension_numbers<[1], [0], [0], [1], [0, 0, 1, 1], [], []>} : vector<32x4xbf16>, vector<4x32xbf16>, vector<32x32xf32> -> vector<32x32xf32>
    %c0_13 = arith.constant 0 : index
    %c0_14 = arith.constant 0 : index
    %11 = vector.load %arg6[%c0_13, %c0_14] : memref<32x1xf32, #tpu.memory_space<vmem>>, vector<32x1xf32>
    %12 = vector.broadcast %11 : vector<32x1xf32> to vector<32x32xf32>
    %13 = arith.addf %10, %12 : vector<32x32xf32>
    %14 = tpu.iota {dimensions = array<i32: 1>} : vector<1x32xi32>
    %c0_i32 = arith.constant 0 : i32
    %15 = arith.cmpi eq, %arg1, %c0_i32 : i32
    %c16_i32 = arith.constant 16 : i32
    %16 = vector.broadcast %c16_i32 : i32 to vector<1x32xi32>
    %17 = arith.cmpi slt, %14, %16 : vector<1x32xi32>
    %18 = vector.broadcast %15 : i1 to vector<1x32xi1>
    %19 = arith.andi %18, %17 : vector<1x32xi1>
    %c1_i32 = arith.constant 1 : i32
    %20 = arith.cmpi eq, %arg1, %c1_i32 : i32
    %c16_i32_15 = arith.constant 16 : i32
    %21 = vector.broadcast %c16_i32_15 : i32 to vector<1x32xi32>
    %22 = arith.cmpi sge, %14, %21 : vector<1x32xi32>
    %23 = vector.broadcast %20 : i1 to vector<1x32xi1>
    %24 = arith.andi %23, %22 : vector<1x32xi1>
    %25 = arith.ori %19, %24 : vector<1x32xi1>
    %cst_16 = arith.constant 0.000000e+00 : f32
    %26 = vector.shape_cast %25 : vector<1x32xi1> to vector<1x32xi1>
    %27 = vector.broadcast %26 : vector<1x32xi1> to vector<32x32xi1>
    %28 = vector.broadcast %cst_16 : f32 to vector<32x32xf32>
    %29 = arith.select %27, %28, %13 : vector<32x32xi1>, vector<32x32xf32>
    %30 = arith.truncf %8 : vector<32x128xf32> to vector<32x128xbf16>
    %31 = arith.truncf %29 : vector<32x32xf32> to vector<32x32xbf16>
    %32 = vector.extract_strided_slice %31 {offsets = [0, 0], sizes = [32, 16], strides = [1, 1]} : vector<32x32xbf16> to vector<32x16xbf16>
    %33 = vector.extract_strided_slice %30 {offsets = [0, 0], sizes = [32, 112], strides = [1, 1]} : vector<32x128xbf16> to vector<32x112xbf16>
    %34 = tpu.concatenate %32, %33 in 1 : vector<32x16xbf16>, vector<32x112xbf16> -> vector<32x128xbf16>
    %35 = vector.extract_strided_slice %30 {offsets = [0, 16], sizes = [32, 112], strides = [1, 1]} : vector<32x128xbf16> to vector<32x112xbf16>
    %36 = vector.extract_strided_slice %31 {offsets = [0, 16], sizes = [32, 16], strides = [1, 1]} : vector<32x32xbf16> to vector<32x16xbf16>
    %37 = tpu.concatenate %35, %36 in 1 : vector<32x112xbf16>, vector<32x16xbf16> -> vector<32x128xbf16>
    %c0_17 = arith.constant 0 : index
    %c0_18 = arith.constant 0 : index
    %38 = vector.load %arg7[%c0_17, %c0_18] : memref<32x9xbf16, #tpu.memory_space<vmem>>, vector<32x9xbf16>
    %39 = vector.extract_strided_slice %38 {offsets = [0, 1], sizes = [32, 1], strides = [1, 1]} : vector<32x9xbf16> to vector<32x1xbf16>
    %40 = vector.broadcast %39 : vector<32x1xbf16> to vector<32x128xbf16>
    %41 = arith.mulf %40, %34 : vector<32x128xbf16>
    %42 = vector.extract_strided_slice %38 {offsets = [0, 4], sizes = [32, 1], strides = [1, 1]} : vector<32x9xbf16> to vector<32x1xbf16>
    %43 = vector.broadcast %42 : vector<32x1xbf16> to vector<32x128xbf16>
    %44 = arith.mulf %43, %30 : vector<32x128xbf16>
    %45 = arith.addf %41, %44 : vector<32x128xbf16>
    %46 = vector.extract_strided_slice %38 {offsets = [0, 7], sizes = [32, 1], strides = [1, 1]} : vector<32x9xbf16> to vector<32x1xbf16>
    %47 = vector.broadcast %46 : vector<32x1xbf16> to vector<32x128xbf16>
    %48 = arith.mulf %47, %37 : vector<32x128xbf16>
    %49 = arith.addf %45, %48 : vector<32x128xbf16>
    %c0_19 = arith.constant 0 : index
    %c0_20 = arith.constant 0 : index
    %50 = vector.load %arg8[%c0_19, %c0_20] : memref<32x1xbf16, #tpu.memory_space<vmem>>, vector<32x1xbf16>
    %51 = vector.broadcast %50 : vector<32x1xbf16> to vector<32x128xbf16>
    %52 = arith.addf %49, %51 : vector<32x128xbf16>
    %53 = vector.extract_strided_slice %38 {offsets = [0, 0], sizes = [32, 1], strides = [1, 1]} : vector<32x9xbf16> to vector<32x1xbf16>
    %54 = vector.broadcast %53 : vector<32x1xbf16> to vector<32x128xbf16>
    %55 = arith.mulf %54, %34 : vector<32x128xbf16>
    %56 = vector.extract_strided_slice %38 {offsets = [0, 3], sizes = [32, 1], strides = [1, 1]} : vector<32x9xbf16> to vector<32x1xbf16>
    %57 = vector.broadcast %56 : vector<32x1xbf16> to vector<32x128xbf16>
    %58 = arith.mulf %57, %30 : vector<32x128xbf16>
    %59 = arith.addf %55, %58 : vector<32x128xbf16>
    %60 = vector.extract_strided_slice %38 {offsets = [0, 6], sizes = [32, 1], strides = [1, 1]} : vector<32x9xbf16> to vector<32x1xbf16>
    %61 = vector.broadcast %60 : vector<32x1xbf16> to vector<32x128xbf16>
    %62 = arith.mulf %61, %37 : vector<32x128xbf16>
    %63 = arith.addf %59, %62 : vector<32x128xbf16>
    %c1_i32_21 = arith.constant 1 : i32
    %64 = tpu.dynamic_rotate %63 by %c1_i32_21 dim 1 : vector<32x128xbf16>, i32 -> vector<32x128xbf16>
    %c0_22 = arith.constant 0 : index
    %c0_23 = arith.constant 0 : index
    %65 = vector.load %arg4[%c0_22, %c0_23] : memref<2x128xbf16, #tpu.memory_space<vmem>>, vector<1x128xbf16>
    %66 = vector.broadcast %65 : vector<1x128xbf16> to vector<32x128xbf16>
    %67 = arith.mulf %64, %66 : vector<32x128xbf16>
    %68 = vector.extract_strided_slice %38 {offsets = [0, 2], sizes = [32, 1], strides = [1, 1]} : vector<32x9xbf16> to vector<32x1xbf16>
    %69 = vector.broadcast %68 : vector<32x1xbf16> to vector<32x128xbf16>
    %70 = arith.mulf %69, %34 : vector<32x128xbf16>
    %71 = vector.extract_strided_slice %38 {offsets = [0, 5], sizes = [32, 1], strides = [1, 1]} : vector<32x9xbf16> to vector<32x1xbf16>
    %72 = vector.broadcast %71 : vector<32x1xbf16> to vector<32x128xbf16>
    %73 = arith.mulf %72, %30 : vector<32x128xbf16>
    %74 = arith.addf %70, %73 : vector<32x128xbf16>
    %75 = vector.extract_strided_slice %38 {offsets = [0, 8], sizes = [32, 1], strides = [1, 1]} : vector<32x9xbf16> to vector<32x1xbf16>
    %76 = vector.broadcast %75 : vector<32x1xbf16> to vector<32x128xbf16>
    %77 = arith.mulf %76, %37 : vector<32x128xbf16>
    %78 = arith.addf %74, %77 : vector<32x128xbf16>
    %c127_i32 = arith.constant 127 : i32
    %79 = tpu.dynamic_rotate %78 by %c127_i32 dim 1 : vector<32x128xbf16>, i32 -> vector<32x128xbf16>
    %c1 = arith.constant 1 : index
    %c0_24 = arith.constant 0 : index
    %80 = vector.load %arg4[%c1, %c0_24] : memref<2x128xbf16, #tpu.memory_space<vmem>>, vector<1x128xbf16>
    %81 = vector.broadcast %80 : vector<1x128xbf16> to vector<32x128xbf16>
    %82 = arith.mulf %79, %81 : vector<32x128xbf16>
    %83 = arith.addf %52, %67 : vector<32x128xbf16>
    %84 = arith.addf %83, %82 : vector<32x128xbf16>
    %cst_25 = arith.constant 5.000000e-01 : bf16
    %85 = vector.broadcast %cst_25 : bf16 to vector<32x128xbf16>
    %86 = arith.mulf %85, %84 : vector<32x128xbf16>
    %87 = arith.mulf %84, %84 : vector<32x128xbf16>
    %88 = arith.mulf %87, %84 : vector<32x128xbf16>
    %cst_26 = arith.constant 4.467770e-02 : bf16
    %89 = vector.broadcast %cst_26 : bf16 to vector<32x128xbf16>
    %90 = arith.mulf %89, %88 : vector<32x128xbf16>
    %91 = arith.addf %84, %90 : vector<32x128xbf16>
    %cst_27 = arith.constant 7.968750e-01 : bf16
    %92 = vector.broadcast %cst_27 : bf16 to vector<32x128xbf16>
    %93 = arith.mulf %92, %91 : vector<32x128xbf16>
    %94 = math.tanh %93 : vector<32x128xbf16>
    %cst_28 = arith.constant 1.000000e+00 : bf16
    %95 = vector.broadcast %cst_28 : bf16 to vector<32x128xbf16>
    %96 = arith.addf %95, %94 : vector<32x128xbf16>
    %97 = arith.mulf %86, %96 : vector<32x128xbf16>
    %c0_29 = arith.constant 0 : index
    %c0_30 = arith.constant 0 : index
    %98 = vector.load %arg9[%c0_29, %c0_30] : memref<4x32xbf16, #tpu.memory_space<vmem>>, vector<4x32xbf16>
    %cst_31 = arith.constant dense<0.000000e+00> : vector<4x128xf32>
    %99 = tpu.matmul %98, %97, %cst_31 {dimension_numbers = #tpu.dot_dimension_numbers<[1], [0], [0], [1], [0, 0, 1, 1], [], []>} : vector<4x32xbf16>, vector<32x128xbf16>, vector<4x128xf32> -> vector<4x128xf32>
    %c0_32 = arith.constant 0 : index
    %c0_33 = arith.constant 0 : index
    %100 = vector.load %arg10[%c0_32, %c0_33] : memref<4x1xf32, #tpu.memory_space<vmem>>, vector<4x1xf32>
    %101 = vector.broadcast %100 : vector<4x1xf32> to vector<4x128xf32>
    %102 = arith.addf %99, %101 : vector<4x128xf32>
    %c0_34 = arith.constant 0 : index
    %c0_35 = arith.constant 0 : index
    %c0_36 = arith.constant 0 : index
    %103 = vector.load %arg11[%c0_34, %c0_35, %c0_36] : memref<1x4x128xf32, #tpu.memory_space<vmem>>, vector<1x4x128xf32>
    %104 = vector.shape_cast %103 : vector<1x4x128xf32> to vector<4x128xf32>
    %105 = vector.shape_cast %102 : vector<4x128xf32> to vector<1x4x128xf32>
    tpu.vector_store %arg11[%c0_34, %c0_35, %c0_36], %105 {strides = array<i32>} : memref<1x4x128xf32, #tpu.memory_space<vmem>>, vector<1x4x128xf32>,
    return
  }
  func.func @transform_0(%arg0: i32, %arg1: i32) -> (i32, i32, i32) {
    %c0_i32 = arith.constant 0 : i32
    %c0_i32_0 = arith.constant 0 : i32
    return %arg0, %c0_i32, %arg1 : i32, i32, i32
  }
  func.func @transform_1(%arg0: i32, %arg1: i32) -> (i32, i32, i32, i32) {
    %c0_i32 = arith.constant 0 : i32
    %c0_i32_0 = arith.constant 0 : i32
    %c0_i32_1 = arith.constant 0 : i32
    return %arg0, %arg1, %c0_i32, %c0_i32_0 : i32, i32, i32, i32
  }
  func.func @transform_2(%arg0: i32, %arg1: i32) -> (i32, i32) {
    %c0_i32 = arith.constant 0 : i32
    %c0_i32_0 = arith.constant 0 : i32
    %c0_i32_1 = arith.constant 0 : i32
    return %c0_i32, %c0_i32_0 : i32, i32
  }
  func.func @transform_3(%arg0: i32, %arg1: i32) -> (i32, i32) {
    %c0_i32 = arith.constant 0 : i32
    %c0_i32_0 = arith.constant 0 : i32
    %c0_i32_1 = arith.constant 0 : i32
    return %c0_i32, %c0_i32_0 : i32, i32
  }
  func.func @transform_4(%arg0: i32, %arg1: i32) -> (i32, i32) {
    %c0_i32 = arith.constant 0 : i32
    %c0_i32_0 = arith.constant 0 : i32
    %c0_i32_1 = arith.constant 0 : i32
    return %c0_i32, %c0_i32_0 : i32, i32
  }
  func.func @transform_5(%arg0: i32, %arg1: i32) -> (i32, i32) {
    %c0_i32 = arith.constant 0 : i32
    %c0_i32_0 = arith.constant 0 : i32
    %c0_i32_1 = arith.constant 0 : i32
    return %c0_i32, %c0_i32_0 : i32, i32
  }
  func.func @transform_6(%arg0: i32, %arg1: i32) -> (i32, i32) {
    %c0_i32 = arith.constant 0 : i32
    %c0_i32_0 = arith.constant 0 : i32
    %c0_i32_1 = arith.constant 0 : i32
    return %c0_i32, %c0_i32_0 : i32, i32
  }
  func.func @transform_7(%arg0: i32, %arg1: i32) -> (i32, i32) {
    %c0_i32 = arith.constant 0 : i32
    %c0_i32_0 = arith.constant 0 : i32
    %c0_i32_1 = arith.constant 0 : i32
    return %c0_i32, %c0_i32_0 : i32, i32
  }
  func.func @transform_8(%arg0: i32, %arg1: i32) -> (i32, i32) {
    %c0_i32 = arith.constant 0 : i32
    %c0_i32_0 = arith.constant 0 : i32
    %c0_i32_1 = arith.constant 0 : i32
    return %c0_i32, %c0_i32_0 : i32, i32
  }
  func.func @transform_9(%arg0: i32, %arg1: i32) -> (i32, i32, i32) {
    %c0_i32 = arith.constant 0 : i32
    %c0_i32_0 = arith.constant 0 : i32
    return %arg0, %c0_i32, %arg1 : i32, i32, i32
  }
}

module attributes {stable_mosaic.version = 11 : i64} {
  func.func @_mlp_kernel(%arg0: i32, %arg1: i32, %arg2: memref<1x4x128xbf16, #tpu.memory_space<vmem>>, %arg3: memref<1x1x4x32xbf16, #tpu.memory_space<vmem>>, %arg4: memref<2x128xbf16, #tpu.memory_space<vmem>>, %arg5: memref<32x4xbf16, #tpu.memory_space<vmem>>, %arg6: memref<32x1xf32, #tpu.memory_space<vmem>>, %arg7: memref<32x9xbf16, #tpu.memory_space<vmem>>, %arg8: memref<32x1xbf16, #tpu.memory_space<vmem>>, %arg9: memref<4x32xbf16, #tpu.memory_space<vmem>>, %arg10: memref<4x1xf32, #tpu.memory_space<vmem>>, %arg11: memref<1x4x128xf32, #tpu.memory_space<vmem>>) attributes {dimension_semantics = [#tpu.dimension_semantics<parallel>, #tpu.dimension_semantics<parallel>], iteration_bounds = array<i64: 2, 2>, scalar_prefetch = 0 : i64, scratch_operands = 0 : i64, tpu.core_type = #tpu.core_type<tc>, window_params = [{transform_indices = @transform_0, window_bounds = array<i64: 1, 4, 128>}, {transform_indices = @transform_1, window_bounds = array<i64: 1, 1, 4, 32>}, {pipeline_mode = #tpu.pipeline_mode<synchronous>, transform_indices = @transform_2, window_bounds = array<i64: 2, 128>}, {pipeline_mode = #tpu.pipeline_mode<synchronous>, transform_indices = @transform_3, window_bounds = array<i64: 32, 4>}, {pipeline_mode = #tpu.pipeline_mode<synchronous>, transform_indices = @transform_4, window_bounds = array<i64: 32, 1>}, {pipeline_mode = #tpu.pipeline_mode<synchronous>, transform_indices = @transform_5, window_bounds = array<i64: 32, 9>}, {pipeline_mode = #tpu.pipeline_mode<synchronous>, transform_indices = @transform_6, window_bounds = array<i64: 32, 1>}, {pipeline_mode = #tpu.pipeline_mode<synchronous>, transform_indices = @transform_7, window_bounds = array<i64: 4, 32>}, {pipeline_mode = #tpu.pipeline_mode<synchronous>, transform_indices = @transform_8, window_bounds = array<i64: 4, 1>}, {transform_indices = @transform_9, window_bounds = array<i64: 1, 4, 128>}]} {
    %c0 = arith.constant 0 : index
    %c0_0 = arith.constant 0 : index
    %c0_1 = arith.constant 0 : index
    %0 = vector.load %arg2[%c0, %c0_0, %c0_1] : memref<1x4x128xbf16, #tpu.memory_space<vmem>>, vector<1x4x128xbf16>
    %1 = vector.shape_cast %0 : vector<1x4x128xbf16> to vector<4x128xbf16>
    %c0_2 = arith.constant 0 : index
    %c0_3 = arith.constant 0 : index
    %c0_4 = arith.constant 0 : index
    %c0_5 = arith.constant 0 : index
    %2 = vector.load %arg3[%c0_2, %c0_3, %c0_4, %c0_5] : memref<1x1x4x32xbf16, #tpu.memory_space<vmem>>, vector<1x1x4x32xbf16>
    %3 = vector.shape_cast %2 : vector<1x1x4x32xbf16> to vector<4x32xbf16>
    %c0_6 = arith.constant 0 : index
    %c0_7 = arith.constant 0 : index
    %4 = vector.load %arg5[%c0_6, %c0_7] : memref<32x4xbf16, #tpu.memory_space<vmem>>, vector<32x4xbf16>
    %cst = arith.constant dense<0.000000e+00> : vector<32x128xf32>
    %5 = tpu.matmul %4, %1, %cst {dimension_numbers = #tpu.dot_dimension_numbers<[1], [0], [0], [1], [0, 0, 1, 1], [], []>} : vector<32x4xbf16>, vector<4x128xbf16>, vector<32x128xf32> -> vector<32x128xf32>
    %c0_8 = arith.constant 0 : index
    %c0_9 = arith.constant 0 : index
    %6 = vector.load %arg6[%c0_8, %c0_9] : memref<32x1xf32, #tpu.memory_space<vmem>>, vector<32x1xf32>
    %7 = vector.broadcast %6 : vector<32x1xf32> to vector<32x128xf32>
    %8 = arith.addf %5, %7 : vector<32x128xf32>
    %c0_10 = arith.constant 0 : index
    %c0_11 = arith.constant 0 : index
    %9 = vector.load %arg5[%c0_10, %c0_11] : memref<32x4xbf16, #tpu.memory_space<vmem>>, vector<32x4xbf16>
    %cst_12 = arith.constant dense<0.000000e+00> : vector<32x32xf32>
    %10 = tpu.matmul %9, %3, %cst_12 {dimension_numbers = #tpu.dot_dimension_numbers<[1], [0], [0], [1], [0, 0, 1, 1], [], []>} : vector<32x4xbf16>, vector<4x32xbf16>, vector<32x32xf32> -> vector<32x32xf32>
    %c0_13 = arith.constant 0 : index
    %c0_14 = arith.constant 0 : index
    %11 = vector.load %arg6[%c0_13, %c0_14] : memref<32x1xf32, #tpu.memory_space<vmem>>, vector<32x1xf32>
    %12 = vector.broadcast %11 : vector<32x1xf32> to vector<32x32xf32>
    %13 = arith.addf %10, %12 : vector<32x32xf32>
    %14 = tpu.iota {dimensions = array<i32: 1>} : vector<1x32xi32>
    %c0_i32 = arith.constant 0 : i32
    %15 = arith.cmpi eq, %arg1, %c0_i32 : i32
    %c16_i32 = arith.constant 16 : i32
    %16 = vector.broadcast %c16_i32 : i32 to vector<1x32xi32>
    %17 = arith.cmpi slt, %14, %16 : vector<1x32xi32>
    %18 = vector.broadcast %15 : i1 to vector<1x32xi1>
    %19 = arith.andi %18, %17 : vector<1x32xi1>
    %c1_i32 = arith.constant 1 : i32
    %20 = arith.cmpi eq, %arg1, %c1_i32 : i32
    %c16_i32_15 = arith.constant 16 : i32
    %21 = vector.broadcast %c16_i32_15 : i32 to vector<1x32xi32>
    %22 = arith.cmpi sge, %14, %21 : vector<1x32xi32>
    %23 = vector.broadcast %20 : i1 to vector<1x32xi1>
    %24 = arith.andi %23, %22 : vector<1x32xi1>
    %25 = arith.ori %19, %24 : vector<1x32xi1>
    %cst_16 = arith.constant 0.000000e+00 : f32
    %26 = vector.shape_cast %25 : vector<1x32xi1> to vector<1x32xi1>
    %27 = vector.broadcast %26 : vector<1x32xi1> to vector<32x32xi1>
    %28 = vector.broadcast %cst_16 : f32 to vector<32x32xf32>
    %29 = arith.select %27, %28, %13 : vector<32x32xi1>, vector<32x32xf32>
    %30 = arith.truncf %8 : vector<32x128xf32> to vector<32x128xbf16>
    %31 = arith.truncf %29 : vector<32x32xf32> to vector<32x32xbf16>
    %32 = vector.extract_strided_slice %31 {offsets = [0, 0], sizes = [32, 16], strides = [1, 1]} : vector<32x32xbf16> to vector<32x16xbf16>
    %33 = vector.extract_strided_slice %30 {offsets = [0, 0], sizes = [32, 112], strides = [1, 1]} : vector<32x128xbf16> to vector<32x112xbf16>
    %34 = tpu.concatenate %32, %33 in 1 : vector<32x16xbf16>, vector<32x112xbf16> -> vector<32x128xbf16>
    %35 = vector.extract_strided_slice %30 {offsets = [0, 16], sizes = [32, 112], strides = [1, 1]} : vector<32x128xbf16> to vector<32x112xbf16>
    %36 = vector.extract_strided_slice %31 {offsets = [0, 16], sizes = [32, 16], strides = [1, 1]} : vector<32x32xbf16> to vector<32x16xbf16>
    %37 = tpu.concatenate %35, %36 in 1 : vector<32x112xbf16>, vector<32x16xbf16> -> vector<32x128xbf16>
    %c0_17 = arith.constant 0 : index
    %c0_18 = arith.constant 0 : index
    %38 = vector.load %arg7[%c0_17, %c0_18] : memref<32x9xbf16, #tpu.memory_space<vmem>>, vector<32x9xbf16>
    %39 = vector.extract_strided_slice %38 {offsets = [0, 1], sizes = [32, 1], strides = [1, 1]} : vector<32x9xbf16> to vector<32x1xbf16>
    %40 = vector.broadcast %39 : vector<32x1xbf16> to vector<32x128xbf16>
    %41 = arith.mulf %40, %34 : vector<32x128xbf16>
    %42 = vector.extract_strided_slice %38 {offsets = [0, 4], sizes = [32, 1], strides = [1, 1]} : vector<32x9xbf16> to vector<32x1xbf16>
    %43 = vector.broadcast %42 : vector<32x1xbf16> to vector<32x128xbf16>
    %44 = arith.mulf %43, %30 : vector<32x128xbf16>
    %45 = arith.addf %41, %44 : vector<32x128xbf16>
    %46 = vector.extract_strided_slice %38 {offsets = [0, 7], sizes = [32, 1], strides = [1, 1]} : vector<32x9xbf16> to vector<32x1xbf16>
    %47 = vector.broadcast %46 : vector<32x1xbf16> to vector<32x128xbf16>
    %48 = arith.mulf %47, %37 : vector<32x128xbf16>
    %49 = arith.addf %45, %48 : vector<32x128xbf16>
    %c0_19 = arith.constant 0 : index
    %c0_20 = arith.constant 0 : index
    %50 = vector.load %arg8[%c0_19, %c0_20] : memref<32x1xbf16, #tpu.memory_space<vmem>>, vector<32x1xbf16>
    %51 = vector.broadcast %50 : vector<32x1xbf16> to vector<32x128xbf16>
    %52 = arith.addf %49, %51 : vector<32x128xbf16>
    %53 = vector.extract_strided_slice %38 {offsets = [0, 0], sizes = [32, 1], strides = [1, 1]} : vector<32x9xbf16> to vector<32x1xbf16>
    %54 = vector.broadcast %53 : vector<32x1xbf16> to vector<32x128xbf16>
    %55 = arith.mulf %54, %34 : vector<32x128xbf16>
    %56 = vector.extract_strided_slice %38 {offsets = [0, 3], sizes = [32, 1], strides = [1, 1]} : vector<32x9xbf16> to vector<32x1xbf16>
    %57 = vector.broadcast %56 : vector<32x1xbf16> to vector<32x128xbf16>
    %58 = arith.mulf %57, %30 : vector<32x128xbf16>
    %59 = arith.addf %55, %58 : vector<32x128xbf16>
    %60 = vector.extract_strided_slice %38 {offsets = [0, 6], sizes = [32, 1], strides = [1, 1]} : vector<32x9xbf16> to vector<32x1xbf16>
    %61 = vector.broadcast %60 : vector<32x1xbf16> to vector<32x128xbf16>
    %62 = arith.mulf %61, %37 : vector<32x128xbf16>
    %63 = arith.addf %59, %62 : vector<32x128xbf16>
    %64 = vector.extract_strided_slice %63 {offsets = [0, 127], sizes = [32, 1], strides = [1, 1]} : vector<32x128xbf16> to vector<32x1xbf16>
    %65 = vector.extract_strided_slice %63 {offsets = [0, 0], sizes = [32, 127], strides = [1, 1]} : vector<32x128xbf16> to vector<32x127xbf16>
    %66 = tpu.concatenate %64, %65 in 1 : vector<32x1xbf16>, vector<32x127xbf16> -> vector<32x128xbf16>
    %c0_21 = arith.constant 0 : index
    %c0_22 = arith.constant 0 : index
    %67 = vector.load %arg4[%c0_21, %c0_22] : memref<2x128xbf16, #tpu.memory_space<vmem>>, vector<1x128xbf16>
    %68 = vector.broadcast %67 : vector<1x128xbf16> to vector<32x128xbf16>
    %69 = arith.mulf %66, %68 : vector<32x128xbf16>
    %70 = vector.extract_strided_slice %38 {offsets = [0, 2], sizes = [32, 1], strides = [1, 1]} : vector<32x9xbf16> to vector<32x1xbf16>
    %71 = vector.broadcast %70 : vector<32x1xbf16> to vector<32x128xbf16>
    %72 = arith.mulf %71, %34 : vector<32x128xbf16>
    %73 = vector.extract_strided_slice %38 {offsets = [0, 5], sizes = [32, 1], strides = [1, 1]} : vector<32x9xbf16> to vector<32x1xbf16>
    %74 = vector.broadcast %73 : vector<32x1xbf16> to vector<32x128xbf16>
    %75 = arith.mulf %74, %30 : vector<32x128xbf16>
    %76 = arith.addf %72, %75 : vector<32x128xbf16>
    %77 = vector.extract_strided_slice %38 {offsets = [0, 8], sizes = [32, 1], strides = [1, 1]} : vector<32x9xbf16> to vector<32x1xbf16>
    %78 = vector.broadcast %77 : vector<32x1xbf16> to vector<32x128xbf16>
    %79 = arith.mulf %78, %37 : vector<32x128xbf16>
    %80 = arith.addf %76, %79 : vector<32x128xbf16>
    %81 = vector.extract_strided_slice %80 {offsets = [0, 1], sizes = [32, 127], strides = [1, 1]} : vector<32x128xbf16> to vector<32x127xbf16>
    %82 = vector.extract_strided_slice %80 {offsets = [0, 0], sizes = [32, 1], strides = [1, 1]} : vector<32x128xbf16> to vector<32x1xbf16>
    %83 = tpu.concatenate %81, %82 in 1 : vector<32x127xbf16>, vector<32x1xbf16> -> vector<32x128xbf16>
    %c1 = arith.constant 1 : index
    %c0_23 = arith.constant 0 : index
    %84 = vector.load %arg4[%c1, %c0_23] : memref<2x128xbf16, #tpu.memory_space<vmem>>, vector<1x128xbf16>
    %85 = vector.broadcast %84 : vector<1x128xbf16> to vector<32x128xbf16>
    %86 = arith.mulf %83, %85 : vector<32x128xbf16>
    %87 = arith.addf %52, %69 : vector<32x128xbf16>
    %88 = arith.addf %87, %86 : vector<32x128xbf16>
    %cst_24 = arith.constant 5.000000e-01 : bf16
    %89 = vector.broadcast %cst_24 : bf16 to vector<32x128xbf16>
    %90 = arith.mulf %89, %88 : vector<32x128xbf16>
    %91 = arith.mulf %88, %88 : vector<32x128xbf16>
    %92 = arith.mulf %91, %88 : vector<32x128xbf16>
    %cst_25 = arith.constant 4.467770e-02 : bf16
    %93 = vector.broadcast %cst_25 : bf16 to vector<32x128xbf16>
    %94 = arith.mulf %93, %92 : vector<32x128xbf16>
    %95 = arith.addf %88, %94 : vector<32x128xbf16>
    %cst_26 = arith.constant 7.968750e-01 : bf16
    %96 = vector.broadcast %cst_26 : bf16 to vector<32x128xbf16>
    %97 = arith.mulf %96, %95 : vector<32x128xbf16>
    %98 = math.tanh %97 : vector<32x128xbf16>
    %cst_27 = arith.constant 1.000000e+00 : bf16
    %99 = vector.broadcast %cst_27 : bf16 to vector<32x128xbf16>
    %100 = arith.addf %99, %98 : vector<32x128xbf16>
    %101 = arith.mulf %90, %100 : vector<32x128xbf16>
    %c0_28 = arith.constant 0 : index
    %c0_29 = arith.constant 0 : index
    %102 = vector.load %arg9[%c0_28, %c0_29] : memref<4x32xbf16, #tpu.memory_space<vmem>>, vector<4x32xbf16>
    %cst_30 = arith.constant dense<0.000000e+00> : vector<4x128xf32>
    %103 = tpu.matmul %102, %101, %cst_30 {dimension_numbers = #tpu.dot_dimension_numbers<[1], [0], [0], [1], [0, 0, 1, 1], [], []>} : vector<4x32xbf16>, vector<32x128xbf16>, vector<4x128xf32> -> vector<4x128xf32>
    %c0_31 = arith.constant 0 : index
    %c0_32 = arith.constant 0 : index
    %104 = vector.load %arg10[%c0_31, %c0_32] : memref<4x1xf32, #tpu.memory_space<vmem>>, vector<4x1xf32>
    %105 = vector.broadcast %104 : vector<4x1xf32> to vector<4x128xf32>
    %106 = arith.addf %103, %105 : vector<4x128xf32>
    %c0_33 = arith.constant 0 : index
    %c0_34 = arith.constant 0 : index
    %c0_35 = arith.constant 0 : index
    %107 = vector.load %arg11[%c0_33, %c0_34, %c0_35] : memref<1x4x128xf32, #tpu.memory_space<vmem>>, vector<1x4x128xf32>
    %108 = vector.shape_cast %107 : vector<1x4x128xf32> to vector<4x128xf32>
    %109 = vector.shape_cast %106 : vector<4x128xf32> to vector<1x4x128xf32>
    tpu.vector_store %arg11[%c0_33, %c0_34, %c0_35], %109 {strides = array<i32>} : memref<1x4x128xf32, #tpu.memory_space<vmem>>, vector<1x4x128xf32>,
    return
  }
  func.func @transform_0(%arg0: i32, %arg1: i32) -> (i32, i32, i32) {
    %c0_i32 = arith.constant 0 : i32
    %c0_i32_0 = arith.constant 0 : i32
    return %arg0, %c0_i32, %arg1 : i32, i32, i32
  }
  func.func @transform_1(%arg0: i32, %arg1: i32) -> (i32, i32, i32, i32) {
    %c0_i32 = arith.constant 0 : i32
    %c0_i32_0 = arith.constant 0 : i32
    %c0_i32_1 = arith.constant 0 : i32
    return %arg0, %arg1, %c0_i32, %c0_i32_0 : i32, i32, i32, i32
  }
  func.func @transform_2(%arg0: i32, %arg1: i32) -> (i32, i32) {
    %c0_i32 = arith.constant 0 : i32
    %c0_i32_0 = arith.constant 0 : i32
    %c0_i32_1 = arith.constant 0 : i32
    return %c0_i32, %c0_i32_0 : i32, i32
  }
  func.func @transform_3(%arg0: i32, %arg1: i32) -> (i32, i32) {
    %c0_i32 = arith.constant 0 : i32
    %c0_i32_0 = arith.constant 0 : i32
    %c0_i32_1 = arith.constant 0 : i32
    return %c0_i32, %c0_i32_0 : i32, i32
  }
  func.func @transform_4(%arg0: i32, %arg1: i32) -> (i32, i32) {
    %c0_i32 = arith.constant 0 : i32
    %c0_i32_0 = arith.constant 0 : i32
    %c0_i32_1 = arith.constant 0 : i32
    return %c0_i32, %c0_i32_0 : i32, i32
  }
  func.func @transform_5(%arg0: i32, %arg1: i32) -> (i32, i32) {
    %c0_i32 = arith.constant 0 : i32
    %c0_i32_0 = arith.constant 0 : i32
    %c0_i32_1 = arith.constant 0 : i32
    return %c0_i32, %c0_i32_0 : i32, i32
  }
  func.func @transform_6(%arg0: i32, %arg1: i32) -> (i32, i32) {
    %c0_i32 = arith.constant 0 : i32
    %c0_i32_0 = arith.constant 0 : i32
    %c0_i32_1 = arith.constant 0 : i32
    return %c0_i32, %c0_i32_0 : i32, i32
  }
  func.func @transform_7(%arg0: i32, %arg1: i32) -> (i32, i32) {
    %c0_i32 = arith.constant 0 : i32
    %c0_i32_0 = arith.constant 0 : i32
    %c0_i32_1 = arith.constant 0 : i32
    return %c0_i32, %c0_i32_0 : i32, i32
  }
  func.func @transform_8(%arg0: i32, %arg1: i32) -> (i32, i32) {
    %c0_i32 = arith.constant 0 : i32
    %c0_i32_0 = arith.constant 0 : i32
    %c0_i32_1 = arith.constant 0 : i32
    return %c0_i32, %c0_i32_0 : i32, i32
  }
  func.func @transform_9(%arg0: i32, %arg1: i32) -> (i32, i32, i32) {
    %c0_i32 = arith.constant 0 : i32
    %c0_i32_0 = arith.constant 0 : i32
    return %arg0, %c0_i32, %arg1 : i32, i32, i32
  }
}

</mosaic_0001>

<bundles_post_ra>
// kernel: tpu_custom_call.1
= control target key start
LH: loop header
LB: loop body
LE: loop exit
PB: predicated region body
PF: predicated region fallthrough
CT: control target
= control target key end

     0   :  { %14 = vsyncpa [#allocation3], 0  ;;  %s2296_s0 = inlined_call_operand.vmem [shape: bf16[2,4,256], index: 0, kind: input, shape index: {}]   ;;  %s2297_s1 = inlined_call_operand.vmem [shape: bf16[2,2,4,32], index: 1, kind: input, shape index: {}]   ;;  %s2298_s2 = inlined_call_operand.vmem [shape: bf16[2,128], index: 2, kind: input, shape index: {}]   ;;  %s2299_s3 = inlined_call_operand.vmem [shape: bf16[32,4], index: 3, kind: input, shape index: {}]   ;;  %s2300_s4 = inlined_call_operand.vmem [shape: f32[32,1], index: 4, kind: input, shape index: {}]   ;;  %s2301_s5 = inlined_call_operand.vmem [shape: bf16[32,9], index: 5, kind: input, shape index: {}]   ;;  %s2302_s6 = inlined_call_operand.vmem [shape: bf16[32,1], index: 6, kind: input, shape index: {}]   ;;  %s2303_s7 = inlined_call_operand.vmem [shape: bf16[4,32], index: 7, kind: input, shape index: {}]   ;;  %s2304_s8 = inlined_call_operand.vmem [shape: f32[4,1], index: 8, kind: input, shape index: {}]   ;;  %s2305_s9 = inlined_call_operand.hbm [shape: f32[2,4,256], index: 9, kind: output, shape index: {}]  }
   0x1   :  { %16 = vsyncpa [#allocation3 + $0x1], 0  ;;  %s1836_s30 = smov 0   ;;  %s1838_s10 = smov 0  }
   0x2   :  { %s1840_s11 = smov 0   ;;  %s1842_s12 = smov 0  }
   0x3   :  { %s1844_s13 = smov 0   ;;  %s1846_s14 = smov 0  }
   0x4   :  { %s1848_s15 = smov 0   ;;  %s1850_s16 = smov 0  }
   0x5 LB: > { %2311 = sst [smem:[#allocation5_spill]] %s1746_s11  ;;  %s1462_s17 = sadd.s32 4294967295, %s1766_s16   ;;  %s1766_s16 = sphi %s1850_s16, %s22_s16   ;;  %s1762_s15 = sphi %s1848_s15, %s2326_s15   ;;  %s1758_s14 = sphi %s1846_s14, %s2325_s14   ;;  %s1754_s13 = sphi %s1844_s13, %s2324_s13   ;;  %s1750_s12 = sphi %s1842_s12, %s2323_s12   ;;  %s1746_s11 = sphi %s1840_s11, %s2322_s11   ;;  %s1742_s10 = sphi %s1838_s10, %s2328_s10   ;;  %s1738_s30 = sphi %s1836_s30, %s2327_s30  }
   0x6   : > { %2312 = sst [smem:[#allocation6_spill]] %s1758_s14  ;;  %s1463_s18 = sadd.s32 4294967294, %s1766_s16  }
   0x7   : > { %2313 = sst [smem:[#allocation7_spill]] %s1762_s15  ;;  %s31_s19 = sadd.s32 1, %s1758_s14 }
   0x8   : > { %p32_p0 = scmp.ge.s32.totalorder %s31_s19, 2  ;;  %s34_s20 = sadd.s32 1, %s1762_s15 }
   0x9   : > { %p256_p1 = scmp.ne.s32.totalorder %s1746_s11, %s1742_s10  ;;  %p257_p2 = scmp.eq.s32.totalorder %s1462_s17, 3 }
   0xa   : > { %s2330_s19 = smov (%p32_p0, %s31_s19), 0  ;;  %s2332_s20 = smov (!%p32_p0, %s34_s20), %s1762_s15 }
   0xb   : > { %2314 = sst [smem:[#allocation8_spill]] %s2330_s19  ;;  %s242_s21 = ssub.s32 %s1758_s14, %s2330_s19 }
   0xc   : > { %p1887_p3 = por %p257_p2, %p256_p1  ;;  %p36_p4 = scmp.ge.s32.totalorder %s2332_s20, 2 }
   0xd   : > { %p262_p5 = scmp.ne.s32.totalorder %s1742_s10, %s1738_s30  ;;  %p263_p6 = scmp.eq.s32.totalorder %s1463_s18, 3 }
   0xe   : > { %p1466_p7 = scmp.ge.s32.totalorder %s1766_s16, 1  ;;  %s2334_s20 = smov (%p36_p4, %s2332_s20), 0 }
   0xf   : > { %2316 = sst [smem:[#allocation9_spill]] %s2334_s20  ;;  %p1896_p8 = por %p263_p6, %p262_p5 }
  0x10   : > { %p324_p9 = scmp.lt.s32.totalorder %s1766_s16, 5  ;;  %s241_s24 = ssub.s32 %s1762_s15, %s2334_s20 }
  0x11   : > { %s246_s25 = sadd.s32 1, %s1746_s11  ;;  %s243_s26 = sor.u32 %s242_s21, %s241_s24 }
  0x12   : > { %p325_p10 = pnand %p1466_p7, %p324_p9  ;;  %p244_p11 = scmp.eq.s32.totalorder %s243_s26, 0 }
  0x13   : > { %p371_p12 = scmp.lt.s32.totalorder (!%p325_p10), %s1754_s13, 1  ;;  %p373_p13 = scmp.lt.s32.totalorder (!%p325_p10), %s1750_s12, 1  ;;  %v1662_v0 = vld [vmem:[%s2299_s3] sm:$0xff] (!%p325_p10)   ;;  %vm432_vm0 = vcmask (!%p325_p10), 31744   ;;  %v400_v1 = vld [vmem:[%s2300_s4 + $0x10] sm:$0xff] (!%p325_p10)  ;;  %v1768_v2 = vmov (!%p325_p10), 0   ;;  %v544_v21 = vlaneseq (!%p325_p10) }
  0x14   : > { %s1905_s27 = scalar_select %p244_p11, %s1746_s11, %s246_s25  }
  0x15   : > { %328 = sbr.rel (%p325_p10) target bundleno = 777 (0x309), region = 56  ;;  %1525 = vmatprep.mubr.msk.bf16.mxu0 (!%p325_p10), %vm432_vm0, %v1662_v0  ;;  %1531 = vmatprep.mubr.msk.bf16.mxu1 (!%p325_p10), %vm432_vm0, %v1662_v0  ;;  %v401_v3 = vld [vmem:[%s2300_s4 + $0x18] sm:$0xff] (!%p325_p10)  ;;  %v398_v4 = vld [vmem:[%s2300_s4] sm:$0xff] (!%p325_p10)  ;;  %vm439_vm1 = vcmask (!%p325_p10), 1041408   ;;  %v399_v7 = vld [vmem:[%s2300_s4 + $0x8] sm:$0xff] (!%p325_p10)  ;;  %v1769_v13 = vmov (!%p325_p10), 3  }
  0x16   : > { %2318 = sst [smem:[#allocation10_spill]] %s1905_s27  ;;  %1634 = vset.pattern.permute.xlu1 (!%p325_p10), %v1768_v2  ;;  %1633 = vset.pattern.permute.xlu0 (!%p325_p10), %v1768_v2  ;;  %v1663_v10 = vld [vmem:[%s2299_s3 + $0x8] sm:$0xff] (!%p325_p10)   ;;  %v1942_v11 = vld [vmem:[%s2301_s5 + $0x4] sm:$0xf] (!%p325_p10)  ;;  %v1950_v12 = vld [vmem:[%s2301_s5] sm:$0xf] (!%p325_p10) }
  0x17   : > { %414 = vperm.xlu1 (!%p325_p10), %1634, %v400_v1   ;;  %404 = vperm.xlu0 (!%p325_p10), %1633, %v398_v4   ;;  %v1770_v14 = vmov (!%p325_p10), 5   ;;  %v1771_v15 = vmov (!%p325_p10), 6   ;;  %v1772_v16 = vmov (!%p325_p10), 2   ;;  %v1962_v17 = vld [vmem:[%s2301_s5 + $0xc] sm:$0xf] (!%p325_p10)  ;;  %v1773_v19 = vmov (!%p325_p10), 8  }
  0x18   : > { %v1971_v18 = vld [vmem:[%s2301_s5 + $0x8] sm:$0xf] (!%p325_p10)  ;;  %v1774_v20 = vmov (!%p325_p10), 1   ;;  %p546_p0 = scmp.eq.s32.totalorder (!%p325_p10), %s1750_s12, 0  ;;  %p552_p1 = scmp.eq.s32.totalorder (!%p325_p10), %s1750_s12, 1  ;;  %v545_v22 = vand.u32 (!%p325_p10), 127, %v544_v21 }
  0x19   : > { %s1777_s19 = smov (!%p325_p10), 96   ;;  %v1778_v54 = vmov (!%p325_p10), 4   ;;  %v799_v55 = vld [vmem:[%s2302_s6] sm:$0xf] (!%p325_p10)  ;;  %v1779_v56 = vmov (!%p325_p10), 7   ;;  %vm575_vm9 = vcmask (!%p325_p10), 130048  }
  0x1a   : > { %vm547_vm2 = vcmp.lt.s32.totalorder (!%p325_p10), %v545_v22, 16  ;;  %vm553_vm4 = vcmp.ge.s32.totalorder (!%p325_p10), %v545_v22, 16  ;;  %v802_v58 = vld [vmem:[%s2302_s6 + $0xc] sm:$0xf] (!%p325_p10)  ;;  %v800_v63 = vld [vmem:[%s2302_s6 + $0x4] sm:$0xf] (!%p325_p10) }
  0x1b   : > { %419 = vperm.xlu1 (!%p325_p10), %1634, %v401_v3   ;;  %409 = vperm.xlu0 (!%p325_p10), %1633, %v399_v7   ;;  %v801_v0 = vld [vmem:[%s2302_s6 + $0x8] sm:$0xf] (!%p325_p10)  ;;  %vm592_vm10 = vcmask (!%p325_p10), 916480   ;;  %s1781_s18 = smov (!%p325_p10), 127   ;;  %vm1784_vm11 = vmmov (!%p325_p10), 0   ;;  %vm1305_vm12 = vcmask (!%p325_p10), 261120  }
  0x1c   : > { %s372_s17 = scalar_select %p371_p12, %s1754_s13, 1 }
  0x1d   : > { %s374_s24 = scalar_select %p373_p13, %s1750_s12, 1 }
  0x1e   : > { %s1468_s25 = sshll.u32 %s372_s17, 1  ;;  %s368_s28 = sand.u32 1, %s1742_s10  }
  0x1f   : > { %s376_s26 = sadd.s32 %s1468_s25, %s374_s24  ;;  %867 = vperm.xlu1 %1634, %v1942_v11   ;;  %1635 = vset.pattern.permute.xlu0 %v1769_v13  ;;  %s1775_s24 = smov 16  }
  0x20   : > { %s1469_s15 = sshll.u32 %s376_s26, 1  ;;  %904 = vperm.xlu0 %1635, %v1950_v12   ;;  %s1776_s25 = smov 112  }
  0x21   : > { %s378_s14 = scalar_lea.vmem %s2296_s0, %s1469_s15  ;;  %s386_s17 = scalar_lea.vmem %s2297_s1, %s1469_s15 }
  0x22   : > { %v392_v5 = vld [vmem:[%s378_s14] sm:$0x3]  ;;  %s548_s21 = scalar_select %p546_p0, 1, 0 }
  0x23   : > { %v393_v6 = vld [vmem:[%s386_s17] sm:$0x3]  ;;  %1543 = vmatprep.subr.msk.bf16.mxu0 %vm439_vm1, %v392_v5  ;;  %v441_v8 = vsel %vm439_vm1, %v392_v5, 0  ;;  %1636 = vset.pattern.permute.xlu1 %v1769_v13  ;;  %s554_s17 = scalar_select %p552_p1, 1, 0 }
  0x24   : > { %1544 = vmatprep.subr.msk.bf16.mxu1 %vm439_vm1, %v393_v6  ;;  %v493_v9 = vsel %vm439_vm1, %v393_v6, 0  ;;  %1524 = vmatpush3.bf16.msra.mxu0 %v441_v8  ;;  %v549_v25 = vstv %s548_s21  ;;  %s1782_s21 = smov 1   ;;  %s1467_s11 = sshll.u32 %s368_s28, 2 }
  0x25   : > { %1530 = vmatpush3.bf16.msra.mxu1 %v493_v9  ;;  %915 = vperm.xlu1 %1636, %v1942_v11   ;;  %v555_v26 = vstv %s554_s17  ;;  %vm550_vm3 = vcmp.eq.s32.totalorder %v549_v25, 1  ;;  %s1506_s14 = sshll.u32 %s1754_s13, 1  ;;  %s370_s29 = scalar_lea.vmem [#allocation2], %s1467_s11 }
  0x26   : > { %1639 = vset.pattern.permute.xlu0 %v1770_v14  ;;  %vm556_vm5 = vcmp.eq.s32.totalorder %v555_v26, 1  ;;  %vm551_vm6 = vmand %vm550_vm3, %vm547_vm2  ;;  %s1362_s15 = sadd.s32 %s1750_s12, %s1506_s14  ;;  %s1351_s12 = scalar_lea.sflag [#allocation3], %s368_s28 }
  0x27   : > { %1526 = vmatmul.mubr.msk.bf16.vlgmr.msra.gmra.mrb[0].mxu0 %vm432_vm0, %v1663_v10  ;;  %1084 = vperm.xlu0 %1639, %v1950_v12   ;;  %vm557_vm7 = vmand %vm556_vm5, %vm553_vm4  ;;  %s1507_s27 = sshll.u32 %s1362_s15, 6 }
  0x28   : > { %1532 = vmatmul.mubr.msk.bf16.vlgmr.msra.gmra.mrb[0].mxu1 %vm432_vm0, %v1663_v10  ;;  %vm1994_vm8 = vmor %vm551_vm6, %vm557_vm7 }
  0x29   : > { %1637 = vset.pattern.permute.xlu1 %v1771_v15 }
  0x2a   : > { %956 = vperm.xlu1 %1637, %v1950_v12  }
  0x2b   : > { %1640 = vset.pattern.permute.xlu0 %v1768_v2 }
  0x2c   : > { %856 = vperm.xlu0 %1640, %v1950_v12  }
  0x2e   : > { %1638 = vset.pattern.permute.xlu1 %v1772_v16 }
  0x2f   : > { %1036 = vperm.xlu1 %1638, %v1950_v12  }
  0x30   : > { %889 = vperm.xlu0 %1640, %v1962_v17  }
  0x33   : > { %1047 = vperm.xlu1 %1638, %v1942_v11  }
  0x34   : > { %1643 = vset.pattern.permute.xlu0 %v1771_v15 }
  0x35   : > { %967 = vperm.xlu0 %1643, %v1942_v11  }
  0x37   : > { %1641 = vset.pattern.permute.xlu1 %v1770_v14 }
  0x38   : > { %1095 = vperm.xlu1 %1641, %v1942_v11  }
  0x39   : > { %978 = vperm.xlu0 %1643, %v1971_v18  }
  0x3c   : > { %1642 = vset.pattern.permute.xlu1 %v1768_v2 }
  0x3d   : > { %878 = vperm.xlu1 %1642, %v1971_v18   ;;  %1648 = vset.pattern.permute.xlu0 %v1772_v16 }
  0x3e   : > { %1069 = vperm.xlu0 %1648, %v1962_v17  }
  0x41   : > { %1644 = vset.pattern.permute.xlu1 %v1769_v13 }
  0x42   : > { %926 = vperm.xlu1 %1644, %v1971_v18   ;;  %1649 = vset.pattern.permute.xlu0 %v1773_v19 }
  0x43   : > { %1136 = vperm.xlu0 %1649, %v1950_v12  }
  0x46   : > { %937 = vperm.xlu1 %1644, %v1962_v17  }
  0x47   : > { %1158 = vperm.xlu0 %1649, %v1971_v18  }
  0x4a   : > { %1645 = vset.pattern.permute.xlu1 %v1773_v19 }
  0x4b   : > { %1147 = vperm.xlu1 %1645, %v1942_v11   ;;  %1652 = vset.pattern.permute.xlu0 %v1774_v20 }
  0x4f   : > { %1646 = vset.pattern.permute.xlu1 %v1771_v15  ;;  %v1780_v15 = vmov 839922192  }
  0x50   : > { %989 = vperm.xlu1 %1646, %v1962_v17  }
  0x54   : > { %1647 = vset.pattern.permute.xlu1 %v1772_v16  ;;  %v609_v16 = vunpack.c.l.s4 %v1780_v15 }
  0x55   : > { %1058 = vperm.xlu1 %1647, %v1971_v18  }
  0x59   : > { %1650 = vset.pattern.permute.xlu1 %v1770_v14 }
  0x5a   : > { %1106 = vperm.xlu1 %1650, %v1971_v18  }
  0x5e   : > { %1117 = vperm.xlu1 %1650, %v1962_v17  }
  0x62   : > { %1651 = vset.pattern.permute.xlu1 %v1773_v19  ;;  %v2082_v19 = vshrl.u32 %v544_v21, 7 }
  0x63   : > { %1169 = vperm.xlu1 %1651, %v1962_v17  }
  0x67   : > { %1653 = vset.pattern.permute.xlu1 %v1774_v20 }
  0x96   : > { %v415_v23 = vpop.permute.xlu1 %414  ;;  %v405_v24 = vpop.permute.xlu0 %404 }
  0x9a   : > { %v420_v27 = vpop.permute.xlu1 %419  ;;  %v410_v28 = vpop.permute.xlu0 %409 }
  0x9e   : > { %v2031_v57 = vpop.permute.xlu1 %867 }
  0x9f   : > { %v2063_v5 = vpop.permute.xlu0 %904 }
  0xa4   : > { %v2039_v59 = vpop.permute.xlu1 %915 }
  0xa6   : > { %v2067_v7 = vpop.permute.xlu0 %1084 }
  0xa9   : > { %v2043_v60 = vpop.permute.xlu1 %956 }
  0xab   : > { %v2069_v8 = vpop.permute.xlu0 %856 }
  0xae   : > { %v2046_v61 = vpop.permute.xlu1 %1036 }
  0xaf   : > { %v2073_v9 = vpop.permute.xlu0 %889 }
  0xb2   : > { %v2050_v62 = vpop.permute.xlu1 %1047 }
  0xb7   : > { %v2059_v1 = vpop.permute.xlu1 %1095 }
  0xbc   : > { %v2061_v3 = vpop.permute.xlu1 %878 }
  0xc1   : > { %v927_v4 = vpop.permute.xlu1 %926 }
  0xc5   : > { %v2065_v6 = vpop.permute.xlu1 %937 }
  0xfa   : > { %v1527_v29 = vpop.f32.mrb[0].mxu0 }
  0xfb   : > { %v1533_v30 = vpop.f32.mrb[0].mxu1  ;;  %v477_v31 = vpop.f32.mrb[1].mxu0  ;;  %v1992_v37 = vadd.f32 %v1527_v29, %v415_v23 }
  0xfc   : > { %v529_v32 = vpop.f32.mrb[1].mxu1  ;;  %v538_v33 = vadd.f32 %v1533_v30, %v415_v23  ;;  %v1528_v35 = vpop.f32.mrb[2].mxu0  ;;  %v2000_v43 = vadd.f32 %v477_v31, %v405_v24 }
  0xfd   : > { %v530_v34 = vadd.f32 %v529_v32, %v405_v24  ;;  %v1534_v36 = vpop.f32.mrb[2].mxu1  ;;  %v1998_v39 = vadd.f32 %v1528_v35, %v420_v27  ;;  %v480_v41 = vpop.f32.mrb[3].mxu0 }
  0xfe   : > { %v541_v40 = vadd.f32 %v1534_v36, %v420_v27  ;;  %v532_v42 = vpop.f32.mrb[3].mxu1  ;;  %v2002_v44 = vadd.f32 %v480_v41, %v410_v28  ;;  %v563_v48 = vsel %vm1994_vm8, 0.0, %v538_v33 }
  0xff   : > { %v533_v45 = vadd.f32 %v532_v42, %v410_v28  ;;  %v561_v46 = vsel %vm1994_vm8, 0.0, %v530_v34  ;;  %v566_v47 = vpack.c.bf16 %v1998_v39, %v1992_v37 }
 0x100   : > { %v564_v49 = vsel %vm1994_vm8, 0.0, %v541_v40  ;;  %v565_v50 = vpack.c.bf16 %v2002_v44, %v2000_v43 }
 0x101   : > { %v2014_v51 = vpack.c.bf16 %v564_v49, %v563_v48  ;;  %v562_v52 = vsel %vm1994_vm8, 0.0, %v533_v45  ;;  %573 = vrot.lane.b32.xlu1 %v566_v47, %s1775_s24  ;;  %v2130_v49 = vpack.c.bf16 %v1992_v37, %v1992_v37 }
 0x102   : > { %v2018_v53 = vpack.c.bf16 %v562_v52, %v561_v46  ;;  %582 = vrot.lane.b32.xlu0 %v565_v50, %s1776_s25  ;;  %v2136_v52 = vpack.c.bf16 %v2000_v43, %v2000_v43 }
 0x105   : > { %571 = vrot.lane.b32.xlu1 %v565_v50, %s1775_s24  ;;  %s2243_s24 = scalar_lea.hbm %s2305_s9, %s1507_s27 }
 0x106   : > { %584 = vrot.lane.b32.xlu0 %v566_v47, %s1776_s25  ;;  %s1785_s25 = smov [#allocation2]  }
 0x109   : > { %588 = vrot.lane.b32.xlu1 %v2018_v53, %s1777_s19 }
 0x10a   : > { %605 = vperm.xlu0 %1652, %v1950_v12  }
 0x10d   : > { %590 = vrot.lane.b32.xlu1 %v2014_v51, %s1777_s19  ;;  %s1676_s19 = sshll.u32 %s1785_s25, 4  ;;  %s1677_s19 = int_to_ptr.vmem [resolvable:$false] %s1676_s19 }
 0x10e   : > { %629 = vperm.xlu0 %1652, %v1971_v18   ;;  %s1678_s20 = scalar_lea.vmem %s1677_s19, 128 }
 0x111   : > { %617 = vperm.xlu1 %1653, %v1942_v11  }
 0x112   : > { %1656 = vset.pattern.permute.xlu0 %v1778_v54 }
 0x113   : > { %681 = vperm.xlu0 %1656, %v1942_v11  }
 0x115   : > { %1654 = vset.pattern.permute.xlu1 %v1778_v54 }
 0x116   : > { %670 = vperm.xlu1 %1654, %v1950_v12  }
 0x117   : > { %703 = vperm.xlu0 %1656, %v1962_v17  }
 0x11a   : > { %1655 = vset.pattern.permute.xlu1 %v1779_v56 }
 0x11b   : > { %734 = vperm.xlu1 %1655, %v1950_v12   ;;  %1660 = vset.pattern.permute.xlu0 %v1768_v2 }
 0x11c   : > { %805 = vperm.xlu0 %1660, %v799_v55  }
 0x11f   : > { %745 = vperm.xlu1 %1655, %v1942_v11   ;;  %v2077_v11 = vpop.permute.xlu0 %967 }
 0x120   : > { %841 = vperm.xlu0 %1660, %v802_v58  }
 0x123   : > { %1657 = vset.pattern.permute.xlu1 %v1774_v20  ;;  %v2079_v13 = vpop.permute.xlu0 %978 }
 0x124   : > { %641 = vperm.xlu1 %1657, %v1962_v17  }
 0x128   : > { %1658 = vset.pattern.permute.xlu1 %v1778_v54  ;;  %v2140_v54 = vpack.c.bf16 %v1998_v39, %v1998_v39 }
 0x129   : > { %692 = vperm.xlu1 %1658, %v1971_v18  }
 0x12d   : > { %1659 = vset.pattern.permute.xlu1 %v1779_v56 }
 0x12e   : > { %756 = vperm.xlu1 %1659, %v1971_v18   ;;  %v610_v18 = vunpack.c.0.s8 %v609_v16 }
 0x130   : > { %v2085_v22 = vsub.s32 %v610_v18, %v2082_v19 }
 0x132   : > { %767 = vperm.xlu1 %1659, %v1962_v17   ;;  %v1070_v17 = vpop.permute.xlu0 %1069  ;;  %v876_v25 = vrot.slane %v2031_v57, %v2085_v22  ;;  %v913_v26 = vrot.slane %v2063_v5, %v2085_v22  ;;  %v924_v27 = vrot.slane %v2039_v59, %v2085_v22  ;;  %v965_v21 = vrot.slane %v2043_v60, %v2085_v22 }
 0x133   : > { %v1093_v28 = vrot.slane %v2067_v7, %v2085_v22  ;;  %v1045_v29 = vrot.slane %v2046_v61, %v2085_v22  ;;  %v1056_v30 = vrot.slane %v2050_v62, %v2085_v22  ;;  %v1104_v31 = vrot.slane %v2059_v1, %v2085_v22 }
 0x134   : > { %v865_v32 = vrot.slane %v2069_v8, %v2085_v22  ;;  %v887_v33 = vrot.slane %v2061_v3, %v2085_v22  ;;  %v935_v34 = vrot.slane %v927_v4, %v2085_v22  ;;  %v898_v35 = vrot.slane %v2073_v9, %v2085_v22 }
 0x135   : > { %v976_v36 = vrot.slane %v2077_v11, %v2085_v22  ;;  %v946_v41 = vrot.slane %v2065_v6, %v2085_v22  ;;  %v987_v42 = vrot.slane %v2079_v13, %v2085_v22  ;;  %v1078_v45 = vrot.slane %v1070_v17, %v2085_v22 }
 0x136   : > { %1661 = vset.pattern.permute.xlu1 %v1768_v2  ;;  %v2071_v2 = vpop.permute.xlu1 %1147  ;;  %v2087_v23 = vpop.permute.xlu0 %1136  ;;  %v2151_v57 = vpack.c.bf16 %v2002_v44, %v2002_v44  ;;  %v949_v61 = vmul.bf16 %v2130_v49, %v935_v34  ;;  %v947_v1 = vmul.bf16 %v2136_v52, %v913_v26  ;;  %v1127_v4 = vmul.bf16 %v2136_v52, %v1093_v28 }
 0x137   : > { %817 = vperm.xlu1 %1661, %v800_v63   ;;  %v1156_v47 = vrot.slane %v2071_v2, %v2085_v22  ;;  %v1145_v50 = vrot.slane %v2087_v23, %v2085_v22  ;;  %v950_v3 = vmul.bf16 %v2140_v54, %v946_v41 }
 0x13a   : > { %v2075_v10 = vpop.permute.xlu1 %989  ;;  %v2116_v38 = vpop.permute.xlu0 %1158 }
 0x13b   : > { %829 = vperm.xlu1 %1661, %v801_v0   ;;  %v998_v37 = vrot.slane %v2075_v10, %v2085_v22 }
 0x13e   : > { %v1059_v12 = vpop.permute.xlu1 %1058 }
 0x13f   : > { %v1067_v56 = vrot.slane %v1059_v12, %v2085_v22 }
 0x142   : > { %v1107_v14 = vpop.permute.xlu1 %1106 }
 0x143   : > { %v1115_v48 = vrot.slane %v1107_v14, %v2085_v22  ;;  %v948_v14 = vmul.bf16 %v2151_v57, %v924_v27 }
 0x145   : > { %v1129_v62 = vmul.bf16 %v2130_v49, %v1115_v48 }
 0x146   : > { %v1118_v20 = vpop.permute.xlu1 %1117 }
 0x147   : > { %v1126_v43 = vrot.slane %v1118_v20, %v2085_v22 }
 0x149   : > { %v1130_v6 = vmul.bf16 %v2140_v54, %v1126_v43 }
 0x14a   : > { %v2089_v24 = vpop.permute.xlu1 %1169 }
 0x14b   : > { %v1178_v39 = vrot.slane %v2089_v24, %v2085_v22 }
 0x173   : > { %v574_v40 = vpop.permute.xlu1 %573 }
 0x174   : > { %v581_v46 = vsel %vm575_vm9, %v2014_v51, %v574_v40  ;;  %v1167_v51 = vrot.slane %v2116_v38, %v2085_v22  ;;  %v583_v63 = vpop.permute.xlu0 %582 }
 0x175   : > { %v2144_v55 = vcombine.low %v581_v46, %v581_v46  ;;  %v2156_v59 = vcombine.high %v581_v46, %v581_v46 }
 0x177   : > { %v572_v58 = vpop.permute.xlu1 %571  ;;  %v1081_v5 = vmul.bf16 %v2144_v55, %v1067_v56  ;;  %v1082_v9 = vmul.bf16 %v2156_v59, %v1078_v45  ;;  %v901_v15 = vmul.bf16 %v2144_v55, %v887_v33  ;;  %v902_v18 = vmul.bf16 %v2156_v59, %v898_v35 }
 0x178   : > { %v578_v60 = vsel %vm575_vm9, %v2018_v53, %v572_v58  ;;  %v1128_v53 = vmul.bf16 %v2151_v57, %v1104_v31  ;;  %v585_v26 = vpop.permute.xlu0 %584 }
 0x179   : > { %v2162_v0 = vcombine.low %v578_v60, %v578_v60  ;;  %v2164_v44 = vcombine.high %v578_v60, %v578_v60  ;;  %v1133_v24 = vadd.bf16 %v1129_v62, %v1081_v5  ;;  %v1134_v34 = vadd.bf16 %v1130_v6, %v1082_v9 }
 0x17a   : > { %v954_v48 = vadd.bf16 %v950_v3, %v902_v18 }
 0x17b   : > { %v1079_v7 = vmul.bf16 %v2162_v0, %v1045_v29  ;;  %v1080_v8 = vmul.bf16 %v2164_v44, %v1056_v30  ;;  %v589_v2 = vpop.permute.xlu1 %588  ;;  %v899_v10 = vmul.bf16 %v2162_v0, %v865_v32  ;;  %v900_v11 = vmul.bf16 %v2164_v44, %v876_v25 }
 0x17c   : > { %v595_v12 = vsel %vm592_vm10, %v583_v63, %v589_v2 }
 0x17d   : > { %v1486_v16 = vcombine.low %v595_v12, %v595_v12  ;;  %v2180_v17 = vcombine.high %v595_v12, %v595_v12  ;;  %v1131_v20 = vadd.bf16 %v1127_v4, %v1079_v7  ;;  %v1132_v23 = vadd.bf16 %v1128_v53, %v1080_v8 }
 0x17e   : > { %v951_v32 = vadd.bf16 %v947_v1, %v899_v10  ;;  %v952_v33 = vadd.bf16 %v948_v14, %v900_v11 }
 0x17f   : > { %v999_v28 = vmul.bf16 %v1486_v16, %v965_v21  ;;  %v1000_v29 = vmul.bf16 %v2180_v17, %v976_v36  ;;  %v1179_v30 = vmul.bf16 %v1486_v16, %v1145_v50  ;;  %v1180_v25 = vmul.bf16 %v2180_v17, %v1156_v47  ;;  %v591_v31 = vpop.permute.xlu1 %590 }
 0x180   : > { %v598_v27 = vsel %vm592_vm10, %v585_v26, %v591_v31  ;;  %v953_v21 = vadd.bf16 %v949_v61, %v901_v15 }
 0x181   : > { %v2186_v38 = vcombine.low %v598_v27, %v598_v27  ;;  %v2188_v40 = vcombine.high %v598_v27, %v598_v27  ;;  %v1183_v35 = vadd.bf16 %v1179_v30, %v1131_v20  ;;  %v1184_v41 = vadd.bf16 %v1180_v25, %v1132_v23 }
 0x182   : > { %v1003_v45 = vadd.bf16 %v999_v28, %v951_v32  ;;  %v1004_v46 = vadd.bf16 %v1000_v29, %v952_v33 }
 0x183   : > { %v1001_v36 = vmul.bf16 %v2186_v38, %v987_v42  ;;  %v1002_v47 = vmul.bf16 %v2188_v40, %v998_v37  ;;  %v1181_v50 = vmul.bf16 %v2186_v38, %v1167_v51  ;;  %v1182_v56 = vmul.bf16 %v2188_v40, %v1178_v39  ;;  %v1287_v42 = vld [vmem:[%s2304_s8] sm:$0xf] }
 0x184   : > { %v1492_v43 = vcombine.low %v1183_v35, %v1184_v41  ;;  %v1490_v58 = vcombine.low %v1003_v45, %v1004_v46  ;;  %v1783_v51 = vmov 0.0  }
 0x185   : > { %v1185_v60 = vadd.bf16 %v1181_v50, %v1133_v24  ;;  %v1186_v62 = vadd.bf16 %v1182_v56, %v1134_v34  ;;  %v1005_v63 = vadd.bf16 %v1001_v36, %v953_v21  ;;  %v1006_v1 = vadd.bf16 %v1002_v47, %v954_v48  ;;  %1535 = vmatprep.subr.bf16.mxu0 %v1783_v51 }
 0x186   : > { %1197 = vrot.lane.b32.xlu0 %v1492_v43, %s1781_s18  ;;  %1017 = vrot.lane.b32.xlu1 %v1490_v58, %s1782_s21  ;;  %v1031_v56 = vsub.s32 0, %v2082_v19 }
 0x187   : > { %v1493_v61 = vcombine.low %v1185_v60, %v1186_v62  ;;  %v1491_v13 = vcombine.low %v1005_v63, %v1006_v1  ;;  %1539 = vmatprep.mubr.msk.bf16.mxu0 %vm1784_vm11, %v1783_v51 }
 0x189   : > { %v606_v3 = vpop.permute.xlu0 %605 }
 0x18a   : > { %1199 = vrot.lane.b32.xlu0 %v1493_v61, %s1781_s18  ;;  %1019 = vrot.lane.b32.xlu1 %v1491_v13, %s1782_s21  ;;  %v614_v6 = vrot.slane %v606_v3, %v2085_v22  ;;  %s1366_s18 = sshll.u32 %s370_s29, 4  ;;  %s2245_s18 = int_to_ptr.vmem [resolvable:$true] %s1366_s18 }
 0x18b   : > { %s1672_s13 = scalar_lea.vmem %s2245_s18, 64  ;;  %p1679_p6 = scmp.lt.s32.totalorder %s2245_s18, %s1677_s19 }
 0x18c   : > { %v665_v9 = vmul.bf16 %v2162_v0, %v614_v6  ;;  %p1673_p2 = scmp.ne.s32.totalorder %s2245_s18, %s1672_s13  ;;  %p1680_p7 = scmp.lt.s32.totalorder %s1678_s20, %s1672_s13 }
 0x18d   : > { %v630_v37 = vpop.permute.xlu0 %629 }
 0x18e   : > { %1290 = vperm.xlu1 %1661, %v1287_v42   ;;  %p1674_p4 = pnand %p1673_p2, %p1887_p3  ;;  %p1681_p9 = por %p1680_p7, %p1679_p6 }
 0x190   : > { %v618_v39 = vpop.permute.xlu1 %617  ;;  %p1675_p5 = pneg %p1674_p4 }
 0x191   : > { %v626_v10 = vrot.slane %v618_v39, %v2085_v22 }
 0x192   : > { %v682_v5 = vpop.permute.xlu0 %681  ;;  %p1682_p10 = pnand %p1681_p9, %p1675_p5 }
 0x193   : > { %v690_v7 = vrot.slane %v682_v5, %v2085_v22  ;;  %v666_v20 = vmul.bf16 %v2164_v44, %v626_v10 }
 0x195   : > { %v671_v4 = vpop.permute.xlu1 %670  ;;  %v726_v12 = vmul.bf16 %v2151_v57, %v690_v7  ;;  %v638_v57 = vrot.slane %v630_v37, %v2085_v22 }
 0x196   : > { %v679_v53 = vrot.slane %v671_v4, %v2085_v22 }
 0x197   : > { %v730_v26 = vadd.bf16 %v726_v12, %v666_v20  ;;  %v667_v27 = vmul.bf16 %v2144_v55, %v638_v57  ;;  %v1025_v55 = vld [vmem:[%s2298_s2] sm:$0x1] }
 0x198   : > { %v725_v8 = vmul.bf16 %v2136_v52, %v679_v53  ;;  %v1205_v47 = vshrl.u32 %v1025_v55, 16  ;;  %v1027_v43 = vpack.i.b16 %v1025_v55, %v1025_v55 }
 0x19a   : > { %v735_v2 = vpop.permute.xlu1 %734  ;;  %v729_v14 = vadd.bf16 %v725_v8, %v665_v9  ;;  %v1032_v62 = vrot.slane %v1027_v43, %v1031_v56 }
 0x19b   : > { %v743_v11 = vrot.slane %v735_v2, %v2085_v22 }
 0x19d   : > { %v791_v15 = vmul.bf16 %v1486_v16, %v743_v11  ;;  %v704_v16 = vpop.permute.xlu0 %703 }
 0x19e   : > { %v746_v18 = vpop.permute.xlu1 %745 }
 0x19f   : > { %v795_v23 = vadd.bf16 %v791_v15, %v729_v14  ;;  %v754_v24 = vrot.slane %v746_v18, %v2085_v22 }
 0x1a1   : > { %v792_v52 = vmul.bf16 %v2180_v17, %v754_v24  ;;  %v712_v17 = vrot.slane %v704_v16, %v2085_v22 }
 0x1a3   : > { %v642_v28 = vpop.permute.xlu1 %641  ;;  %v796_v29 = vadd.bf16 %v792_v52, %v730_v26  ;;  %v728_v45 = vmul.bf16 %v2140_v54, %v712_v17 }
 0x1a4   : > { %v650_v25 = vrot.slane %v642_v28, %v2085_v22 }
 0x1a6   : > { %v668_v33 = vmul.bf16 %v2156_v59, %v650_v25  ;;  %v806_v59 = vpop.permute.xlu0 %805 }
 0x1a7   : > { %v814_v63 = vrot.slane %v806_v59, %v2085_v22 }
 0x1a8   : > { %v693_v0 = vpop.permute.xlu1 %692  ;;  %v732_v48 = vadd.bf16 %v728_v45, %v668_v33 }
 0x1a9   : > { %v701_v30 = vrot.slane %v693_v0, %v2085_v22  ;;  %v851_v42 = vadd.bf16 %v814_v63, %v795_v23 }
 0x1aa   : > { %v842_v58 = vpop.permute.xlu0 %841 }
 0x1ab   : > { %v727_v44 = vmul.bf16 %v2130_v49, %v701_v30  ;;  %v850_v19 = vrot.slane %v842_v58, %v2085_v22 }
 0x1ad   : > { %v757_v31 = vpop.permute.xlu1 %756  ;;  %v731_v34 = vadd.bf16 %v727_v44, %v667_v27 }
 0x1ae   : > { %v765_v32 = vrot.slane %v757_v31, %v2085_v22 }
 0x1b0   : > { %v793_v35 = vmul.bf16 %v2186_v38, %v765_v32  ;;  %v1206_v38 = vpack.i.b16 %v1205_v47, %v1205_v47 }
 0x1b1   : > { %v768_v41 = vpop.permute.xlu1 %767 }
 0x1b2   : > { %v776_v46 = vrot.slane %v768_v41, %v2085_v22  ;;  %v797_v21 = vadd.bf16 %v793_v35, %v731_v34  ;;  %v1211_v60 = vrot.slane %v1206_v38, %v1031_v56 }
 0x1b4   : > { %v794_v49 = vmul.bf16 %v2188_v40, %v776_v46 }
 0x1b6   : > { %v798_v36 = vadd.bf16 %v794_v49, %v732_v48  ;;  %v818_v50 = vpop.permute.xlu1 %817 }
 0x1b7   : > { %v826_v40 = vrot.slane %v818_v50, %v2085_v22 }
 0x1b8   : > { %v854_v15 = vadd.bf16 %v850_v19, %v798_v36 }
 0x1b9   : > { %v852_v37 = vadd.bf16 %v826_v40, %v796_v29 }
 0x1ba   : > { %v830_v54 = vpop.permute.xlu1 %829 }
 0x1bb   : > { %v838_v5 = vrot.slane %v830_v54, %v2085_v22 }
 0x1bd   : > { %v853_v18 = vadd.bf16 %v838_v5, %v797_v21 }
 0x1f8   : > { %v1198_v1 = vpop.permute.xlu0 %1197  ;;  %v1018_v61 = vpop.permute.xlu1 %1017 }
 0x1f9   : > { %v1212_v13 = vmul.bf16 %v1211_v60, %v1198_v1  ;;  %v1033_v3 = vmul.bf16 %v1032_v62, %v1018_v61 }
 0x1fb   : > { %v1494_v39 = vcombine.low %v1033_v3, %v1033_v3  ;;  %v1495_v4 = vcombine.high %v1033_v3, %v1033_v3  ;;  %v1498_v53 = vcombine.low %v1212_v13, %v1212_v13  ;;  %v1499_v8 = vcombine.high %v1212_v13, %v1212_v13 }
 0x1fc   : > { %v1200_v6 = vpop.permute.xlu0 %1199  ;;  %v1020_v7 = vpop.permute.xlu1 %1019 }
 0x1fd   : > { %v1228_v2 = vadd.bf16 %v1494_v39, %v851_v42  ;;  %v1229_v9 = vadd.bf16 %v1495_v4, %v852_v37  ;;  %v1034_v10 = vmul.bf16 %v1032_v62, %v1020_v7  ;;  %v1213_v11 = vmul.bf16 %v1211_v60, %v1200_v6  ;;  %v1286_v37 = vld [vmem:[%s2303_s7] sm:$0x3] }
 0x1ff   : > { %v1246_v12 = vadd.bf16 %v1498_v53, %v1228_v2  ;;  %v1247_v14 = vadd.bf16 %v1499_v8, %v1229_v9  ;;  %v1496_v20 = vcombine.low %v1034_v10, %v1034_v10  ;;  %v1497_v23 = vcombine.high %v1034_v10, %v1034_v10 }
 0x200   : > { %v1500_v52 = vcombine.low %v1213_v11, %v1213_v11  ;;  %v1501_v28 = vcombine.high %v1213_v11, %v1213_v11 }
 0x201   : > { %v1254_v24 = vmul.bf16 %v1246_v12, %v1246_v12  ;;  %v1255_v26 = vmul.bf16 %v1247_v14, %v1247_v14  ;;  %v1230_v29 = vadd.bf16 %v1496_v20, %v853_v18  ;;  %v1231_v22 = vadd.bf16 %v1497_v23, %v854_v15 }
 0x202   : > { %v1250_v50 = vmul.bf16 1056980736, %v1246_v12  ;;  %v1251_v56 = vmul.bf16 1056980736, %v1247_v14 }
 0x203   : > { %v1258_v0 = vmul.bf16 %v1254_v24, %v1246_v12  ;;  %v1259_v30 = vmul.bf16 %v1255_v26, %v1247_v14  ;;  %v1248_v57 = vadd.bf16 %v1500_v52, %v1230_v29  ;;  %v1249_v16 = vadd.bf16 %v1501_v28, %v1231_v22 }
 0x205   : > { %v1262_v25 = vmul.bf16 1027030327, %v1258_v0  ;;  %v1263_v44 = vmul.bf16 1027030327, %v1259_v30  ;;  %v1256_v31 = vmul.bf16 %v1248_v57, %v1248_v57  ;;  %v1257_v27 = vmul.bf16 %v1249_v16, %v1249_v16 }
 0x206   : > { %v1252_v63 = vmul.bf16 1056980736, %v1248_v57  ;;  %v1253_v1 = vmul.bf16 1056980736, %v1249_v16 }
 0x207   : > { %v1266_v17 = vadd.bf16 %v1262_v25, %v1246_v12  ;;  %v1267_v32 = vadd.bf16 %v1263_v44, %v1247_v14  ;;  %v1260_v33 = vmul.bf16 %v1256_v31, %v1248_v57  ;;  %v1261_v34 = vmul.bf16 %v1257_v27, %v1249_v16 }
 0x209   : > { %v1270_v35 = vmul.bf16 1061961548, %v1266_v17  ;;  %v1271_v41 = vmul.bf16 1061961548, %v1267_v32  ;;  %v1264_v45 = vmul.bf16 1027030327, %v1260_v33 }
 0x20a   : > { %v1265_v46 = vmul.bf16 1027030327, %v1261_v34 }
 0x20b   : > { %1664 = vtanh.bf16 %v1270_v35  ;;  %v1268_v21 = vadd.bf16 %v1264_v45, %v1248_v57 }
 0x20c   : > { %v1269_v48 = vadd.bf16 %v1265_v46, %v1249_v16  ;;  %1666 = vtanh.bf16 %v1271_v41 }
 0x20d   : > { %v1272_v49 = vmul.bf16 1061961548, %v1268_v21  ;;  %v1291_v39 = vpop.permute.xlu1 %1290 }
 0x20e   : > { %v1273_v36 = vmul.bf16 1061961548, %v1269_v48 }
 0x20f   : > { %1668 = vtanh.bf16 %v1272_v49 }
 0x210   : > { %1670 = vtanh.bf16 %v1273_v36 }
 0x216   : > { %v1665_v55 = vpop.eup %1664 }
 0x217   : > { %v1667_v47 = vpop.eup %1666  ;;  %v1278_v59 = vadd.bf16 1065369472, %v1665_v55 }
 0x218   : > { %v1279_v38 = vadd.bf16 1065369472, %v1667_v47 }
 0x219   : > { %v1282_v43 = vmul.bf16 %v1278_v59, %v1250_v50 }
 0x21a   : > { %v1283_v58 = vmul.bf16 %v1279_v38, %v1251_v56  ;;  %v1669_v54 = vpop.eup %1668 }
 0x21b   : > { %v1671_v60 = vpop.eup %1670  ;;  %v1280_v40 = vadd.bf16 1065369472, %v1669_v54 }
 0x21c   : > { %v1502_v62 = vcombine.low %v1282_v43, %v1283_v58  ;;  %v1281_v61 = vadd.bf16 1065369472, %v1671_v60 }
 0x21d   : > { %v1284_v13 = vmul.bf16 %v1280_v40, %v1252_v63 }
 0x21e   : > { %1536 = vmatpush3.bf16.msra.mxu0 %v1502_v62  ;;  %v1285_v3 = vmul.bf16 %v1281_v61, %v1253_v1 }
 0x21f   : > { %1537 = vmatprep.subr.bf16.mxu0 %v1783_v51 }
 0x220   : > { %v1503_v42 = vcombine.low %v1284_v13, %v1285_v3 }
 0x222   : > { %1538 = vmatpush3.bf16.msra.mxu0 %v1503_v42 }
 0x225   : > { %1540 = vmatmul.mubr.msk.bf16.vlgmr.msra.gmra.mrb[4].mxu0 %vm1305_vm12, %v1286_v37 }
 0x2f8   : > { %v1343_v4 = vpop.f32.mrb[4].mxu0 }
 0x2f9   : > { %v1344_v51 = vadd.f32 %v1343_v4, %v1291_v39  ;;  %v1541_v19 = vpop.f32.mrb[5].mxu0 }
 0x2fa   : > { %v1346_v5 = vpop.f32.mrb[6].mxu0 }
 0x2fb   : > { %1349 = vst [vmem:[%s370_s29] sm:$0xf] %v1344_v51  ;;  %v1542_v53 = vpop.f32.mrb[7].mxu0 }
 0x2fc   : > { %1685 = shalt.err (!%p1682_p10)
}
 0x2fd   : > { %s1686_s26 = scalar_lea.hbm %s2243_s24, 64  ;;  %s1690_s14 = scalar_lea.hbm %s2305_s9, 256 }
 0x2fe   : > { %p1687_p11 = scmp.ne.s32.totalorder %s2243_s24, %s1686_s26  ;;  %p1691_p0 = scmp.lt.u32.totalorder %s2243_s24, %s2305_s9 }
 0x2ff   : > { %p1692_p1 = scmp.lt.u32.totalorder %s1690_s14, %s1686_s26  ;;  %p1694_p4 = scmp.lt.u32.totalorder %s1686_s26, %s2243_s24 }
 0x300   : > { %p1688_p12 = pnand %p1687_p11, %p1887_p3 }
 0x301   : > { %p1693_p2 = por %p1692_p1, %p1691_p0 }
 0x302   : > { %p1689_p13 = pneg %p1688_p12 }
 0x303   : > { %p1695_p5 = por %p1694_p4, %p1693_p2 }
 0x305   : > { %p1696_p6 = pnand %p1695_p5, %p1689_p13 }
 0x307   : > { %1699 = shalt.err (!%p1696_p6)
}
 0x308   : > { %1545 = dma.vmem_to_hbm [thread:$0]  (%p1887_p3), %s2245_s18, 64, %s2243_s24, %s1351_s12  }
 0x309 PF: > { %p1551_p7 = scmp.ge.s32.totalorder %s1766_s16, 2  ;;  %s1378_s29 = sand.u32 1, %s1738_s30  }
 0x30a   : > { %s1379_s21 = scalar_lea.sflag [#allocation3], %s1378_s29 }
 0x30b   : > { %p1548_p9 = pnand %p1551_p7, %p1896_p8 }
 0x30d   : > { %1733 = dma.done.wait (!%p1548_p9), %s1379_s21, 64  }
 0x30e   : > { %1735 = vsyncadd (!%p1548_p9), %s1379_s21, 4294967232  ;;  %s22_s16 = sadd.s32 1, %s1766_s16   ;;  %s2321_s17 = sld [smem:[#allocation5_spill]] }
 0x30f   : > { %p19_p10 = scmp.ge.s32.totalorder %s22_s16, 6   ;;  %s2322_s11 = sld [smem:[#allocation10_spill]] }
 0x310   : > { %s2323_s12 = sld [smem:[#allocation6_spill]]  ;;  %s2324_s13 = sld [smem:[#allocation7_spill]] }
 0x311   : > { %s2325_s14 = sld [smem:[#allocation8_spill]]  ;;  %s2326_s15 = sld [smem:[#allocation9_spill]] }
 0x312   : > { %s2327_s30 = smov %s1742_s10  ;;  %21 = sbr.rel (!%p19_p10) target bundleno = 5 (0x5), region = 94 }
 0x314   : > { %s2328_s10 = smov %s2321_s17 }
 0x319   :  { %1384 = vsyncpa [#allocation3], 1 }
 0x31a   :  { %1386 = vsyncpa [#allocation3 + $0x1], 1 }

</bundles_post_ra>
